<compile_context>
chip_gen: v5e
topology: v5e:2x2
jax: 0.10.0
libtpu: 0.0.40
codegen_flags: <defaults>
</compile_context>

<pallas_src>
import functools

import jax
import jax.numpy as jnp
from jax import lax
from jax.experimental import pallas as pl
from jax.experimental.pallas import tpu as pltpu


def _dfab_kernel(x_ref, gamma_ref, beta_ref, wq_ref, wk_ref, wv_ref, wo_ref,
                 wval_ref, wgate_ref, wff2_ref, o_ref,
                 qh_ref, attn_ref, *, batch_tile, seq, heads, dim_head, eps):
    """One grid step == `batch_tile` batch elements, flattened to rows."""
    x = x_ref[...]                         # (batch_tile*seq, dim) f32
    gamma = gamma_ref[...]                 # (1, dim)
    beta = beta_ref[...]                   # (1, dim)

    # ---- LayerNorm over features (F.layer_norm semantics), kept in f32
    mean = jnp.mean(x, axis=-1, keepdims=True)
    xc = x - mean
    var = jnp.mean(xc * xc, axis=-1, keepdims=True)
    xn = xc * lax.rsqrt(var + eps) * gamma + beta
    xn_bf = xn.astype(jnp.bfloat16)

    # ---- projections: single big matmuls, bf16 operands, f32 accumulation.
    # (scale already folded into wq; wkv / wff1 pre-split host-side)
    q = jnp.dot(xn_bf, wq_ref[...], preferred_element_type=jnp.float32)   # (M, h*dh)
    k = jnp.dot(xn_bf, wk_ref[...], preferred_element_type=jnp.float32)   # (M, dh)
    v = jnp.dot(xn_bf, wv_ref[...], preferred_element_type=jnp.float32)   # (M, dh)

    contract_last = (((1,), (1,)), ((), ()))   # contract dh of q with dh of k

    # ---- attention: K/V shared across heads, so stack heads along rows and
    # do one (heads*seq, dh) x (dh, seq) score matmul + one softmax + one
    # (heads*seq, seq) x (seq, dh) AV matmul per batch element.
    # TODO(synk): for long sequences, tile queries + online softmax instead
    # of materializing the full (heads*seq, seq) score matrix.
    for t in range(batch_tile):
        r0 = t * seq
        for hh in range(heads):            # relayout into head-stacked scratch
            qh_ref[hh * seq:(hh + 1) * seq, :] = (
                q[r0:r0 + seq, hh * dim_head:(hh + 1) * dim_head]
                .astype(jnp.bfloat16))
        kb = k[r0:r0 + seq, :].astype(jnp.bfloat16)     # (seq, dh)
        vb = v[r0:r0 + seq, :].astype(jnp.bfloat16)     # (seq, dh)
        qh = qh_ref[...]                                # (heads*seq, dh) bf16

        sim = lax.dot_general(qh, kb, contract_last,
                              preferred_element_type=jnp.float32)  # (h*seq, seq)
        m = jnp.max(sim, axis=-1, keepdims=True)
        p = jnp.exp(sim - m)
        l = jnp.sum(p, axis=-1, keepdims=True)
        oh = jnp.dot(p.astype(jnp.bfloat16), vb,
                     preferred_element_type=jnp.float32)            # (h*seq, dh)
        oh = oh * pl.reciprocal(l, approx=True)

        for hh in range(heads):            # write head outputs into (M, h*dh)
            attn_ref[r0:r0 + seq, hh * dim_head:(hh + 1) * dim_head] = (
                oh[hh * seq:(hh + 1) * seq, :].astype(jnp.bfloat16))

    out_proj = jnp.dot(attn_ref[...], wo_ref[...],
                       preferred_element_type=jnp.float32)           # (M, dim)

    # ---- feedforward: Linear -> SwiGLU -> Linear on the normed x
    val = jnp.dot(xn_bf, wval_ref[...], preferred_element_type=jnp.float32)
    gate = jnp.dot(xn_bf, wgate_ref[...], preferred_element_type=jnp.float32)
    sw = (gate * jax.nn.sigmoid(gate)) * val
    ff = jnp.dot(sw.astype(jnp.bfloat16), wff2_ref[...],
                 preferred_element_type=jnp.float32)                 # (M, dim)

    o_ref[...] = (out_proj + ff).astype(o_ref.dtype)


def _pick_batch_tile(b, n):
    """Largest divisor of b whose fused row count stays modest."""
    best = 1
    for cand in range(1, b + 1):
        if b % cand == 0 and cand * n <= 1024:
            best = cand
    return best


def dual_feature_alignment_block(x, params, *, heads, dim_head, eps=1e-5):
    """x: (b, n, dim) float32. params: dict of pre-transposed (in, out) weights."""
    b, n, dim = x.shape
    inner_dim = heads * dim_head
    ff_inner = params["wff2"].shape[0]
    scale = float(dim_head) ** -0.5
    bf16 = jnp.bfloat16

    gamma = params["gamma"].reshape(1, dim).astype(jnp.float32)
    beta = params["beta"].reshape(1, dim).astype(jnp.float32)
    wq = (params["wq"] * scale).astype(bf16)             # fold q scale
    wk = params["wkv"][:, :dim_head].astype(bf16)        # split fused kv
    wv = params["wkv"][:, dim_head:].astype(bf16)
    wo = params["wo"].astype(bf16)
    w_val = params["wff1"][:, :ff_inner].astype(bf16)    # split fused SwiGLU
    w_gate = params["wff1"][:, ff_inner:].astype(bf16)
    wff2 = params["wff2"].astype(bf16)

    tb = _pick_batch_tile(b, n)
    rows = tb * n
    x2 = x.reshape(b * n, dim)

    # ---- VMEM budget (weights double-buffered by default + io + scratch +
    # headroom for compiler temporaries), clamped to a safe range.
    weights = (wq, wk, wv, wo, w_val, w_gate, wff2)
    w_bytes = sum(int(w.size) * 2 for w in weights)
    io_bytes = 2 * 2 * rows * dim * 4
    scratch_bytes = heads * n * dim_head * 2 + rows * inner_dim * 2
    inter_bytes = (rows * (inner_dim + 2 * dim_head + 2 * ff_inner + 4 * dim) * 4
                   + 3 * heads * n * n * 4)
    vmem_limit = int(min(
        112 << 20,
        max(32 << 20,
            2 * (2 * w_bytes + io_bytes + scratch_bytes + inter_bytes) + (8 << 20))))

    flops = int(2 * b * n * (dim * inner_dim + 2 * dim * dim_head
                             + inner_dim * dim + 2 * dim * ff_inner
                             + ff_inner * dim)
                + 4 * b * heads * n * n * dim_head)
    transcendentals = int(b * heads * n * n + b * n * ff_inner)
    bytes_accessed = int(x2.size * 4 + w_bytes + b * n * dim * 4 + 2 * dim * 4)

    kernel = functools.partial(_dfab_kernel, batch_tile=tb, seq=n, heads=heads,
                               dim_head=dim_head, eps=eps)

    def wspec(w):
        return pl.BlockSpec(w.shape, lambda i: (0, 0))

    out = pl.pallas_call(
        kernel,
        out_shape=jax.ShapeDtypeStruct((b * n, dim), x.dtype),
        grid_spec=pltpu.PrefetchScalarGridSpec(
            num_scalar_prefetch=0,
            grid=(b // tb,),
            in_specs=[
                pl.BlockSpec((rows, dim), lambda i: (i, 0)),   # x rows
                wspec(gamma), wspec(beta),
                wspec(wq), wspec(wk), wspec(wv), wspec(wo),
                wspec(w_val), wspec(w_gate), wspec(wff2),
            ],
            out_specs=pl.BlockSpec((rows, dim), lambda i: (i, 0)),
            scratch_shapes=[
                pltpu.VMEM((heads * n, dim_head), bf16),       # head-stacked q
                pltpu.VMEM((rows, inner_dim), bf16),           # attention output
            ]),
        compiler_params=pltpu.CompilerParams(
            dimension_semantics=("parallel",),
            vmem_limit_bytes=vmem_limit),
        cost_estimate=pl.CostEstimate(flops=flops,
                                      transcendentals=transcendentals,
                                      bytes_accessed=bytes_accessed),
    )(x2, gamma, beta, wq, wk, wv, wo, w_val, w_gate, wff2)
    return out.reshape(b, n, dim)


def _reference(x, params, *, heads, dim_head, eps=1e-5):
    """Pure-JAX f32 reference mirroring the PyTorch forward."""
    b, n, dim = x.shape
    scale = float(dim_head) ** -0.5
    gamma, beta = params["gamma"], params["beta"]
    mean = jnp.mean(x, axis=-1, keepdims=True)
    var = jnp.mean((x - mean) ** 2, axis=-1, keepdims=True)
    xn = (x - mean) / jnp.sqrt(var + eps) * gamma + beta
    q = xn @ params["wq"]
    q = q.reshape(b, n, heads, dim_head).transpose(0, 2, 1, 3) * scale
    kv = xn @ params["wkv"]
    k, v = kv[..., :dim_head], kv[..., dim_head:]
    sim = jnp.einsum("bhid,bjd->bhij", q, k)
    sim = sim - jnp.max(sim, axis=-1, keepdims=True)
    attn = jax.nn.softmax(sim, axis=-1)
    out = jnp.einsum("bhij,bjd->bhid", attn, v)
    out = out.transpose(0, 2, 1, 3).reshape(b, n, heads * dim_head)
    out = out @ params["wo"]
    ff1 = xn @ params["wff1"]
    ff_inner = params["wff2"].shape[0]
    val, gate = ff1[..., :ff_inner], ff1[..., ff_inner:]
    ff = (jax.nn.silu(gate) * val) @ params["wff2"]
    return out + ff


if __name__ == "__main__":
    # Small shapes consistent with the module defaults.
    batch, seq, dim = 2, 8, 32
    heads, dim_head, ff_mult = 8, 32, 4
    inner_dim = heads * dim_head          # 256
    ff_inner = ff_mult * dim              # 128

    key = jax.random.PRNGKey(0)
    ks = jax.random.split(key, 8)
    s = 0.02
    params = {
        "gamma": jnp.ones((dim,), jnp.float32),
        "beta": jnp.zeros((dim,), jnp.float32),
        # stored pre-transposed: (in_features, out_features)
        "wq": s * jax.random.normal(ks[0], (dim, inner_dim), jnp.float32),
        "wkv": s * jax.random.normal(ks[1], (dim, 2 * dim_head), jnp.float32),
        "wo": s * jax.random.normal(ks[2], (inner_dim, dim), jnp.float32),
        "wff1": s * jax.random.normal(ks[3], (dim, 2 * ff_inner), jnp.float32),
        "wff2": s * jax.random.normal(ks[4], (ff_inner, dim), jnp.float32),
    }
    x = jax.random.normal(ks[5], (batch, seq, dim), jnp.float32)

    out = dual_feature_alignment_block(x, params, heads=heads, dim_head=dim_head)
    out = jax.block_until_ready(out)

    ref = _reference(x, params, heads=heads, dim_head=dim_head)
    assert out.shape == (batch, seq, dim)
    # bf16 matmul operands (f32 accumulation) -> compare with bf16-level tolerance
    assert jnp.allclose(out, ref, atol=5e-3, rtol=5e-2), (
        float(jnp.max(jnp.abs(out - ref))))

    print("KERNEL_OK")
</pallas_src>

<mosaic_0001>
module attributes {stable_mosaic.version = 11 : i64} {
  func.func @_dfab_kernel(%arg0: i32, %arg1: memref<16x32xf32, #tpu.memory_space<vmem>>, %arg2: memref<1x32xf32, #tpu.memory_space<vmem>>, %arg3: memref<1x32xf32, #tpu.memory_space<vmem>>, %arg4: memref<32x256xbf16, #tpu.memory_space<vmem>>, %arg5: memref<32x32xbf16, #tpu.memory_space<vmem>>, %arg6: memref<32x32xbf16, #tpu.memory_space<vmem>>, %arg7: memref<256x32xbf16, #tpu.memory_space<vmem>>, %arg8: memref<32x128xbf16, #tpu.memory_space<vmem>>, %arg9: memref<32x128xbf16, #tpu.memory_space<vmem>>, %arg10: memref<128x32xbf16, #tpu.memory_space<vmem>>, %arg11: memref<16x32xf32, #tpu.memory_space<vmem>>, %arg12: memref<64x32xbf16, #tpu.memory_space<vmem>>, %arg13: memref<16x256xbf16, #tpu.memory_space<vmem>>) attributes {dimension_semantics = [#tpu.dimension_semantics<parallel>], iteration_bounds = array<i64: 1>, scalar_prefetch = 0 : i64, scratch_operands = 2 : i64, tpu.core_type = #tpu.core_type<tc>, window_params = [{transform_indices = @transform_0, window_bounds = array<i64: 16, 32>}, {pipeline_mode = #tpu.pipeline_mode<synchronous>, transform_indices = @transform_1, window_bounds = array<i64: 1, 32>}, {pipeline_mode = #tpu.pipeline_mode<synchronous>, transform_indices = @transform_2, window_bounds = array<i64: 1, 32>}, {pipeline_mode = #tpu.pipeline_mode<synchronous>, transform_indices = @transform_3, window_bounds = array<i64: 32, 256>}, {pipeline_mode = #tpu.pipeline_mode<synchronous>, transform_indices = @transform_4, window_bounds = array<i64: 32, 32>}, {pipeline_mode = #tpu.pipeline_mode<synchronous>, transform_indices = @transform_5, window_bounds = array<i64: 32, 32>}, {pipeline_mode = #tpu.pipeline_mode<synchronous>, transform_indices = @transform_6, window_bounds = array<i64: 256, 32>}, {pipeline_mode = #tpu.pipeline_mode<synchronous>, transform_indices = @transform_7, window_bounds = array<i64: 32, 128>}, {pipeline_mode = #tpu.pipeline_mode<synchronous>, transform_indices = @transform_8, window_bounds = array<i64: 32, 128>}, {pipeline_mode = #tpu.pipeline_mode<synchronous>, transform_indices = @transform_9, window_bounds = array<i64: 128, 32>}, {transform_indices = @transform_10, window_bounds = array<i64: 16, 32>}]} {
    %c0 = arith.constant 0 : index
    %c0_0 = arith.constant 0 : index
    %0 = vector.load %arg1[%c0, %c0_0] : memref<16x32xf32, #tpu.memory_space<vmem>>, vector<16x32xf32>
    %c0_1 = arith.constant 0 : index
    %c0_2 = arith.constant 0 : index
    %1 = vector.load %arg2[%c0_1, %c0_2] : memref<1x32xf32, #tpu.memory_space<vmem>>, vector<1x32xf32>
    %c0_3 = arith.constant 0 : index
    %c0_4 = arith.constant 0 : index
    %2 = vector.load %arg3[%c0_3, %c0_4] : memref<1x32xf32, #tpu.memory_space<vmem>>, vector<1x32xf32>
    %cst = arith.constant dense<0.000000e+00> : vector<16xf32>
    %3 = vector.multi_reduction <add>, %0, %cst [1] : vector<16x32xf32> to vector<16xf32>
    %4 = vector.shape_cast %3 : vector<16xf32> to vector<16x1xf32>
    %cst_5 = arith.constant 3.200000e+01 : f32
    %5 = vector.broadcast %cst_5 : f32 to vector<16x1xf32>
    %6 = arith.divf %4, %5 : vector<16x1xf32>
    %7 = vector.broadcast %6 : vector<16x1xf32> to vector<16x32xf32>
    %8 = arith.subf %0, %7 : vector<16x32xf32>
    %9 = arith.mulf %8, %8 : vector<16x32xf32>
    %cst_6 = arith.constant dense<0.000000e+00> : vector<16xf32>
    %10 = vector.multi_reduction <add>, %9, %cst_6 [1] : vector<16x32xf32> to vector<16xf32>
    %11 = vector.shape_cast %10 : vector<16xf32> to vector<16x1xf32>
    %cst_7 = arith.constant 3.200000e+01 : f32
    %12 = vector.broadcast %cst_7 : f32 to vector<16x1xf32>
    %13 = arith.divf %11, %12 : vector<16x1xf32>
    %cst_8 = arith.constant 9.99999974E-6 : f32
    %14 = vector.broadcast %cst_8 : f32 to vector<16x1xf32>
    %15 = arith.addf %13, %14 : vector<16x1xf32>
    %16 = math.rsqrt %15 : vector<16x1xf32>
    %17 = vector.broadcast %16 : vector<16x1xf32> to vector<16x32xf32>
    %18 = arith.mulf %8, %17 : vector<16x32xf32>
    %19 = vector.broadcast %1 : vector<1x32xf32> to vector<16x32xf32>
    %20 = arith.mulf %18, %19 : vector<16x32xf32>
    %21 = vector.broadcast %2 : vector<1x32xf32> to vector<16x32xf32>
    %22 = arith.addf %20, %21 : vector<16x32xf32>
    %23 = arith.truncf %22 : vector<16x32xf32> to vector<16x32xbf16>
    %c0_9 = arith.constant 0 : index
    %c0_10 = arith.constant 0 : index
    %24 = vector.load %arg4[%c0_9, %c0_10] : memref<32x256xbf16, #tpu.memory_space<vmem>>, vector<32x256xbf16>
    %cst_11 = arith.constant dense<0.000000e+00> : vector<16x256xf32>
    %25 = tpu.matmul %23, %24, %cst_11 {dimension_numbers = #tpu.dot_dimension_numbers<[1], [0], [0], [1], [0, 0, 1, 1], [], []>} : vector<16x32xbf16>, vector<32x256xbf16>, vector<16x256xf32> -> vector<16x256xf32>
    %c0_12 = arith.constant 0 : index
    %c0_13 = arith.constant 0 : index
    %26 = vector.load %arg5[%c0_12, %c0_13] : memref<32x32xbf16, #tpu.memory_space<vmem>>, vector<32x32xbf16>
    %cst_14 = arith.constant dense<0.000000e+00> : vector<16x32xf32>
    %27 = tpu.matmul %23, %26, %cst_14 {dimension_numbers = #tpu.dot_dimension_numbers<[1], [0], [0], [1], [0, 0, 1, 1], [], []>} : vector<16x32xbf16>, vector<32x32xbf16>, vector<16x32xf32> -> vector<16x32xf32>
    %c0_15 = arith.constant 0 : index
    %c0_16 = arith.constant 0 : index
    %28 = vector.load %arg6[%c0_15, %c0_16] : memref<32x32xbf16, #tpu.memory_space<vmem>>, vector<32x32xbf16>
    %cst_17 = arith.constant dense<0.000000e+00> : vector<16x32xf32>
    %29 = tpu.matmul %23, %28, %cst_17 {dimension_numbers = #tpu.dot_dimension_numbers<[1], [0], [0], [1], [0, 0, 1, 1], [], []>} : vector<16x32xbf16>, vector<32x32xbf16>, vector<16x32xf32> -> vector<16x32xf32>
    %30 = vector.extract_strided_slice %25 {offsets = [0, 0], sizes = [8, 32], strides = [1, 1]} : vector<16x256xf32> to vector<8x32xf32>
    %31 = arith.truncf %30 : vector<8x32xf32> to vector<8x32xbf16>
    %c0_18 = arith.constant 0 : index
    %c0_19 = arith.constant 0 : index
    %32 = vector.load %arg12[%c0_18, %c0_19] : memref<64x32xbf16, #tpu.memory_space<vmem>>, vector<8x32xbf16>
    tpu.vector_store %arg12[%c0_18, %c0_19], %31 {strides = array<i32>} : memref<64x32xbf16, #tpu.memory_space<vmem>>, vector<8x32xbf16>,
    %33 = vector.extract_strided_slice %25 {offsets = [0, 32], sizes = [8, 32], strides = [1, 1]} : vector<16x256xf32> to vector<8x32xf32>
    %34 = arith.truncf %33 : vector<8x32xf32> to vector<8x32xbf16>
    %c8 = arith.constant 8 : index
    %c0_20 = arith.constant 0 : index
    %35 = vector.load %arg12[%c8, %c0_20] : memref<64x32xbf16, #tpu.memory_space<vmem>>, vector<8x32xbf16>
    tpu.vector_store %arg12[%c8, %c0_20], %34 {strides = array<i32>} : memref<64x32xbf16, #tpu.memory_space<vmem>>, vector<8x32xbf16>,
    %36 = vector.extract_strided_slice %25 {offsets = [0, 64], sizes = [8, 32], strides = [1, 1]} : vector<16x256xf32> to vector<8x32xf32>
    %37 = arith.truncf %36 : vector<8x32xf32> to vector<8x32xbf16>
    %c16 = arith.constant 16 : index
    %c0_21 = arith.constant 0 : index
    %38 = vector.load %arg12[%c16, %c0_21] : memref<64x32xbf16, #tpu.memory_space<vmem>>, vector<8x32xbf16>
    tpu.vector_store %arg12[%c16, %c0_21], %37 {strides = array<i32>} : memref<64x32xbf16, #tpu.memory_space<vmem>>, vector<8x32xbf16>,
    %39 = vector.extract_strided_slice %25 {offsets = [0, 96], sizes = [8, 32], strides = [1, 1]} : vector<16x256xf32> to vector<8x32xf32>
    %40 = arith.truncf %39 : vector<8x32xf32> to vector<8x32xbf16>
    %c24 = arith.constant 24 : index
    %c0_22 = arith.constant 0 : index
    %41 = vector.load %arg12[%c24, %c0_22] : memref<64x32xbf16, #tpu.memory_space<vmem>>, vector<8x32xbf16>
    tpu.vector_store %arg12[%c24, %c0_22], %40 {strides = array<i32>} : memref<64x32xbf16, #tpu.memory_space<vmem>>, vector<8x32xbf16>,
    %42 = vector.extract_strided_slice %25 {offsets = [0, 128], sizes = [8, 32], strides = [1, 1]} : vector<16x256xf32> to vector<8x32xf32>
    %43 = arith.truncf %42 : vector<8x32xf32> to vector<8x32xbf16>
    %c32 = arith.constant 32 : index
    %c0_23 = arith.constant 0 : index
    %44 = vector.load %arg12[%c32, %c0_23] : memref<64x32xbf16, #tpu.memory_space<vmem>>, vector<8x32xbf16>
    tpu.vector_store %arg12[%c32, %c0_23], %43 {strides = array<i32>} : memref<64x32xbf16, #tpu.memory_space<vmem>>, vector<8x32xbf16>,
    %45 = vector.extract_strided_slice %25 {offsets = [0, 160], sizes = [8, 32], strides = [1, 1]} : vector<16x256xf32> to vector<8x32xf32>
    %46 = arith.truncf %45 : vector<8x32xf32> to vector<8x32xbf16>
    %c40 = arith.constant 40 : index
    %c0_24 = arith.constant 0 : index
    %47 = vector.load %arg12[%c40, %c0_24] : memref<64x32xbf16, #tpu.memory_space<vmem>>, vector<8x32xbf16>
    tpu.vector_store %arg12[%c40, %c0_24], %46 {strides = array<i32>} : memref<64x32xbf16, #tpu.memory_space<vmem>>, vector<8x32xbf16>,
    %48 = vector.extract_strided_slice %25 {offsets = [0, 192], sizes = [8, 32], strides = [1, 1]} : vector<16x256xf32> to vector<8x32xf32>
    %49 = arith.truncf %48 : vector<8x32xf32> to vector<8x32xbf16>
    %c48 = arith.constant 48 : index
    %c0_25 = arith.constant 0 : index
    %50 = vector.load %arg12[%c48, %c0_25] : memref<64x32xbf16, #tpu.memory_space<vmem>>, vector<8x32xbf16>
    tpu.vector_store %arg12[%c48, %c0_25], %49 {strides = array<i32>} : memref<64x32xbf16, #tpu.memory_space<vmem>>, vector<8x32xbf16>,
    %51 = vector.extract_strided_slice %25 {offsets = [0, 224], sizes = [8, 32], strides = [1, 1]} : vector<16x256xf32> to vector<8x32xf32>
    %52 = arith.truncf %51 : vector<8x32xf32> to vector<8x32xbf16>
    %c56 = arith.constant 56 : index
    %c0_26 = arith.constant 0 : index
    %53 = vector.load %arg12[%c56, %c0_26] : memref<64x32xbf16, #tpu.memory_space<vmem>>, vector<8x32xbf16>
    tpu.vector_store %arg12[%c56, %c0_26], %52 {strides = array<i32>} : memref<64x32xbf16, #tpu.memory_space<vmem>>, vector<8x32xbf16>,
    %54 = vector.extract_strided_slice %27 {offsets = [0, 0], sizes = [8, 32], strides = [1, 1]} : vector<16x32xf32> to vector<8x32xf32>
    %55 = arith.truncf %54 : vector<8x32xf32> to vector<8x32xbf16>
    %56 = vector.extract_strided_slice %29 {offsets = [0, 0], sizes = [8, 32], strides = [1, 1]} : vector<16x32xf32> to vector<8x32xf32>
    %57 = arith.truncf %56 : vector<8x32xf32> to vector<8x32xbf16>
    %c0_27 = arith.constant 0 : index
    %c0_28 = arith.constant 0 : index
    %58 = vector.load %arg12[%c0_27, %c0_28] : memref<64x32xbf16, #tpu.memory_space<vmem>>, vector<64x32xbf16>
    %cst_29 = arith.constant dense<0.000000e+00> : vector<64x8xf32>
    %59 = tpu.matmul %58, %55, %cst_29 {dimension_numbers = #tpu.dot_dimension_numbers<[1], [1], [0], [0], [0, 0, 1, 0], [], []>} : vector<64x32xbf16>, vector<8x32xbf16>, vector<64x8xf32> -> vector<64x8xf32>
    %cst_30 = arith.constant dense<0xFF800000> : vector<64xf32>
    %60 = vector.multi_reduction <maximumf>, %59, %cst_30 [1] : vector<64x8xf32> to vector<64xf32>
    %61 = vector.shape_cast %60 : vector<64xf32> to vector<64x1xf32>
    %62 = vector.broadcast %61 : vector<64x1xf32> to vector<64x8xf32>
    %63 = arith.subf %59, %62 : vector<64x8xf32>
    %64 = math.exp %63 : vector<64x8xf32>
    %cst_31 = arith.constant dense<0.000000e+00> : vector<64xf32>
    %65 = vector.multi_reduction <add>, %64, %cst_31 [1] : vector<64x8xf32> to vector<64xf32>
    %66 = vector.shape_cast %65 : vector<64xf32> to vector<64x1xf32>
    %67 = arith.truncf %64 : vector<64x8xf32> to vector<64x8xbf16>
    %cst_32 = arith.constant dense<0.000000e+00> : vector<64x32xf32>
    %68 = tpu.matmul %67, %57, %cst_32 {dimension_numbers = #tpu.dot_dimension_numbers<[1], [0], [0], [1], [0, 0, 1, 1], [], []>} : vector<64x8xbf16>, vector<8x32xbf16>, vector<64x32xf32> -> vector<64x32xf32>
    %69 = tpu.reciprocal %66 {approx = true} : vector<64x1xf32> -> vector<64x1xf32>
    %70 = vector.broadcast %69 : vector<64x1xf32> to vector<64x32xf32>
    %71 = arith.mulf %68, %70 : vector<64x32xf32>
    %72 = vector.extract_strided_slice %71 {offsets = [0, 0], sizes = [8, 32], strides = [1, 1]} : vector<64x32xf32> to vector<8x32xf32>
    %73 = arith.truncf %72 : vector<8x32xf32> to vector<8x32xbf16>
    %c0_33 = arith.constant 0 : index
    %c0_34 = arith.constant 0 : index
    %74 = vector.load %arg13[%c0_33, %c0_34] : memref<16x256xbf16, #tpu.memory_space<vmem>>, vector<8x32xbf16>
    tpu.vector_store %arg13[%c0_33, %c0_34], %73 {strides = array<i32>} : memref<16x256xbf16, #tpu.memory_space<vmem>>, vector<8x32xbf16>,
    %75 = vector.extract_strided_slice %71 {offsets = [8, 0], sizes = [8, 32], strides = [1, 1]} : vector<64x32xf32> to vector<8x32xf32>
    %76 = arith.truncf %75 : vector<8x32xf32> to vector<8x32xbf16>
    %c0_35 = arith.constant 0 : index
    %c32_36 = arith.constant 32 : index
    %77 = vector.load %arg13[%c0_35, %c32_36] : memref<16x256xbf16, #tpu.memory_space<vmem>>, vector<8x32xbf16>
    tpu.vector_store %arg13[%c0_35, %c32_36], %76 {strides = array<i32>} : memref<16x256xbf16, #tpu.memory_space<vmem>>, vector<8x32xbf16>,
    %78 = vector.extract_strided_slice %71 {offsets = [16, 0], sizes = [8, 32], strides = [1, 1]} : vector<64x32xf32> to vector<8x32xf32>
    %79 = arith.truncf %78 : vector<8x32xf32> to vector<8x32xbf16>
    %c0_37 = arith.constant 0 : index
    %c64 = arith.constant 64 : index
    %80 = vector.load %arg13[%c0_37, %c64] : memref<16x256xbf16, #tpu.memory_space<vmem>>, vector<8x32xbf16>
    tpu.vector_store %arg13[%c0_37, %c64], %79 {strides = array<i32>} : memref<16x256xbf16, #tpu.memory_space<vmem>>, vector<8x32xbf16>,
    %81 = vector.extract_strided_slice %71 {offsets = [24, 0], sizes = [8, 32], strides = [1, 1]} : vector<64x32xf32> to vector<8x32xf32>
    %82 = arith.truncf %81 : vector<8x32xf32> to vector<8x32xbf16>
    %c0_38 = arith.constant 0 : index
    %c96 = arith.constant 96 : index
    %83 = vector.load %arg13[%c0_38, %c96] : memref<16x256xbf16, #tpu.memory_space<vmem>>, vector<8x32xbf16>
    tpu.vector_store %arg13[%c0_38, %c96], %82 {strides = array<i32>} : memref<16x256xbf16, #tpu.memory_space<vmem>>, vector<8x32xbf16>,
    %84 = vector.extract_strided_slice %71 {offsets = [32, 0], sizes = [8, 32], strides = [1, 1]} : vector<64x32xf32> to vector<8x32xf32>
    %85 = arith.truncf %84 : vector<8x32xf32> to vector<8x32xbf16>
    %c0_39 = arith.constant 0 : index
    %c128 = arith.constant 128 : index
    %86 = vector.load %arg13[%c0_39, %c128] : memref<16x256xbf16, #tpu.memory_space<vmem>>, vector<8x32xbf16>
    tpu.vector_store %arg13[%c0_39, %c128], %85 {strides = array<i32>} : memref<16x256xbf16, #tpu.memory_space<vmem>>, vector<8x32xbf16>,
    %87 = vector.extract_strided_slice %71 {offsets = [40, 0], sizes = [8, 32], strides = [1, 1]} : vector<64x32xf32> to vector<8x32xf32>
    %88 = arith.truncf %87 : vector<8x32xf32> to vector<8x32xbf16>
    %c0_40 = arith.constant 0 : index
    %c160 = arith.constant 160 : index
    %89 = vector.load %arg13[%c0_40, %c160] : memref<16x256xbf16, #tpu.memory_space<vmem>>, vector<8x32xbf16>
    tpu.vector_store %arg13[%c0_40, %c160], %88 {strides = array<i32>} : memref<16x256xbf16, #tpu.memory_space<vmem>>, vector<8x32xbf16>,
    %90 = vector.extract_strided_slice %71 {offsets = [48, 0], sizes = [8, 32], strides = [1, 1]} : vector<64x32xf32> to vector<8x32xf32>
    %91 = arith.truncf %90 : vector<8x32xf32> to vector<8x32xbf16>
    %c0_41 = arith.constant 0 : index
    %c192 = arith.constant 192 : index
    %92 = vector.load %arg13[%c0_41, %c192] : memref<16x256xbf16, #tpu.memory_space<vmem>>, vector<8x32xbf16>
    tpu.vector_store %arg13[%c0_41, %c192], %91 {strides = array<i32>} : memref<16x256xbf16, #tpu.memory_space<vmem>>, vector<8x32xbf16>,
    %93 = vector.extract_strided_slice %71 {offsets = [56, 0], sizes = [8, 32], strides = [1, 1]} : vector<64x32xf32> to vector<8x32xf32>
    %94 = arith.truncf %93 : vector<8x32xf32> to vector<8x32xbf16>
    %c0_42 = arith.constant 0 : index
    %c224 = arith.constant 224 : index
    %95 = vector.load %arg13[%c0_42, %c224] : memref<16x256xbf16, #tpu.memory_space<vmem>>, vector<8x32xbf16>
    tpu.vector_store %arg13[%c0_42, %c224], %94 {strides = array<i32>} : memref<16x256xbf16, #tpu.memory_space<vmem>>, vector<8x32xbf16>,
    %96 = vector.extract_strided_slice %25 {offsets = [8, 0], sizes = [8, 32], strides = [1, 1]} : vector<16x256xf32> to vector<8x32xf32>
    %97 = arith.truncf %96 : vector<8x32xf32> to vector<8x32xbf16>
    %c0_43 = arith.constant 0 : index
    %c0_44 = arith.constant 0 : index
    %98 = vector.load %arg12[%c0_43, %c0_44] : memref<64x32xbf16, #tpu.memory_space<vmem>>, vector<8x32xbf16>
    tpu.vector_store %arg12[%c0_43, %c0_44], %97 {strides = array<i32>} : memref<64x32xbf16, #tpu.memory_space<vmem>>, vector<8x32xbf16>,
    %99 = vector.extract_strided_slice %25 {offsets = [8, 32], sizes = [8, 32], strides = [1, 1]} : vector<16x256xf32> to vector<8x32xf32>
    %100 = arith.truncf %99 : vector<8x32xf32> to vector<8x32xbf16>
    %c8_45 = arith.constant 8 : index
    %c0_46 = arith.constant 0 : index
    %101 = vector.load %arg12[%c8_45, %c0_46] : memref<64x32xbf16, #tpu.memory_space<vmem>>, vector<8x32xbf16>
    tpu.vector_store %arg12[%c8_45, %c0_46], %100 {strides = array<i32>} : memref<64x32xbf16, #tpu.memory_space<vmem>>, vector<8x32xbf16>,
    %102 = vector.extract_strided_slice %25 {offsets = [8, 64], sizes = [8, 32], strides = [1, 1]} : vector<16x256xf32> to vector<8x32xf32>
    %103 = arith.truncf %102 : vector<8x32xf32> to vector<8x32xbf16>
    %c16_47 = arith.constant 16 : index
    %c0_48 = arith.constant 0 : index
    %104 = vector.load %arg12[%c16_47, %c0_48] : memref<64x32xbf16, #tpu.memory_space<vmem>>, vector<8x32xbf16>
    tpu.vector_store %arg12[%c16_47, %c0_48], %103 {strides = array<i32>} : memref<64x32xbf16, #tpu.memory_space<vmem>>, vector<8x32xbf16>,
    %105 = vector.extract_strided_slice %25 {offsets = [8, 96], sizes = [8, 32], strides = [1, 1]} : vector<16x256xf32> to vector<8x32xf32>
    %106 = arith.truncf %105 : vector<8x32xf32> to vector<8x32xbf16>
    %c24_49 = arith.constant 24 : index
    %c0_50 = arith.constant 0 : index
    %107 = vector.load %arg12[%c24_49, %c0_50] : memref<64x32xbf16, #tpu.memory_space<vmem>>, vector<8x32xbf16>
    tpu.vector_store %arg12[%c24_49, %c0_50], %106 {strides = array<i32>} : memref<64x32xbf16, #tpu.memory_space<vmem>>, vector<8x32xbf16>,
    %108 = vector.extract_strided_slice %25 {offsets = [8, 128], sizes = [8, 32], strides = [1, 1]} : vector<16x256xf32> to vector<8x32xf32>
    %109 = arith.truncf %108 : vector<8x32xf32> to vector<8x32xbf16>
    %c32_51 = arith.constant 32 : index
    %c0_52 = arith.constant 0 : index
    %110 = vector.load %arg12[%c32_51, %c0_52] : memref<64x32xbf16, #tpu.memory_space<vmem>>, vector<8x32xbf16>
    tpu.vector_store %arg12[%c32_51, %c0_52], %109 {strides = array<i32>} : memref<64x32xbf16, #tpu.memory_space<vmem>>, vector<8x32xbf16>,
    %111 = vector.extract_strided_slice %25 {offsets = [8, 160], sizes = [8, 32], strides = [1, 1]} : vector<16x256xf32> to vector<8x32xf32>
    %112 = arith.truncf %111 : vector<8x32xf32> to vector<8x32xbf16>
    %c40_53 = arith.constant 40 : index
    %c0_54 = arith.constant 0 : index
    %113 = vector.load %arg12[%c40_53, %c0_54] : memref<64x32xbf16, #tpu.memory_space<vmem>>, vector<8x32xbf16>
    tpu.vector_store %arg12[%c40_53, %c0_54], %112 {strides = array<i32>} : memref<64x32xbf16, #tpu.memory_space<vmem>>, vector<8x32xbf16>,
    %114 = vector.extract_strided_slice %25 {offsets = [8, 192], sizes = [8, 32], strides = [1, 1]} : vector<16x256xf32> to vector<8x32xf32>
    %115 = arith.truncf %114 : vector<8x32xf32> to vector<8x32xbf16>
    %c48_55 = arith.constant 48 : index
    %c0_56 = arith.constant 0 : index
    %116 = vector.load %arg12[%c48_55, %c0_56] : memref<64x32xbf16, #tpu.memory_space<vmem>>, vector<8x32xbf16>
    tpu.vector_store %arg12[%c48_55, %c0_56], %115 {strides = array<i32>} : memref<64x32xbf16, #tpu.memory_space<vmem>>, vector<8x32xbf16>,
    %117 = vector.extract_strided_slice %25 {offsets = [8, 224], sizes = [8, 32], strides = [1, 1]} : vector<16x256xf32> to vector<8x32xf32>
    %118 = arith.truncf %117 : vector<8x32xf32> to vector<8x32xbf16>
    %c56_57 = arith.constant 56 : index
    %c0_58 = arith.constant 0 : index
    %119 = vector.load %arg12[%c56_57, %c0_58] : memref<64x32xbf16, #tpu.memory_space<vmem>>, vector<8x32xbf16>
    tpu.vector_store %arg12[%c56_57, %c0_58], %118 {strides = array<i32>} : memref<64x32xbf16, #tpu.memory_space<vmem>>, vector<8x32xbf16>,
    %120 = vector.extract_strided_slice %27 {offsets = [8, 0], sizes = [8, 32], strides = [1, 1]} : vector<16x32xf32> to vector<8x32xf32>
    %121 = arith.truncf %120 : vector<8x32xf32> to vector<8x32xbf16>
    %122 = vector.extract_strided_slice %29 {offsets = [8, 0], sizes = [8, 32], strides = [1, 1]} : vector<16x32xf32> to vector<8x32xf32>
    %123 = arith.truncf %122 : vector<8x32xf32> to vector<8x32xbf16>
    %c0_59 = arith.constant 0 : index
    %c0_60 = arith.constant 0 : index
    %124 = vector.load %arg12[%c0_59, %c0_60] : memref<64x32xbf16, #tpu.memory_space<vmem>>, vector<64x32xbf16>
    %cst_61 = arith.constant dense<0.000000e+00> : vector<64x8xf32>
    %125 = tpu.matmul %124, %121, %cst_61 {dimension_numbers = #tpu.dot_dimension_numbers<[1], [1], [0], [0], [0, 0, 1, 0], [], []>} : vector<64x32xbf16>, vector<8x32xbf16>, vector<64x8xf32> -> vector<64x8xf32>
    %cst_62 = arith.constant dense<0xFF800000> : vector<64xf32>
    %126 = vector.multi_reduction <maximumf>, %125, %cst_62 [1] : vector<64x8xf32> to vector<64xf32>
    %127 = vector.shape_cast %126 : vector<64xf32> to vector<64x1xf32>
    %128 = vector.broadcast %127 : vector<64x1xf32> to vector<64x8xf32>
    %129 = arith.subf %125, %128 : vector<64x8xf32>
    %130 = math.exp %129 : vector<64x8xf32>
    %cst_63 = arith.constant dense<0.000000e+00> : vector<64xf32>
    %131 = vector.multi_reduction <add>, %130, %cst_63 [1] : vector<64x8xf32> to vector<64xf32>
    %132 = vector.shape_cast %131 : vector<64xf32> to vector<64x1xf32>
    %133 = arith.truncf %130 : vector<64x8xf32> to vector<64x8xbf16>
    %cst_64 = arith.constant dense<0.000000e+00> : vector<64x32xf32>
    %134 = tpu.matmul %133, %123, %cst_64 {dimension_numbers = #tpu.dot_dimension_numbers<[1], [0], [0], [1], [0, 0, 1, 1], [], []>} : vector<64x8xbf16>, vector<8x32xbf16>, vector<64x32xf32> -> vector<64x32xf32>
    %135 = tpu.reciprocal %132 {approx = true} : vector<64x1xf32> -> vector<64x1xf32>
    %136 = vector.broadcast %135 : vector<64x1xf32> to vector<64x32xf32>
    %137 = arith.mulf %134, %136 : vector<64x32xf32>
    %138 = vector.extract_strided_slice %137 {offsets = [0, 0], sizes = [8, 32], strides = [1, 1]} : vector<64x32xf32> to vector<8x32xf32>
    %139 = arith.truncf %138 : vector<8x32xf32> to vector<8x32xbf16>
    %c8_65 = arith.constant 8 : index
    %c0_66 = arith.constant 0 : index
    %140 = vector.load %arg13[%c8_65, %c0_66] : memref<16x256xbf16, #tpu.memory_space<vmem>>, vector<8x32xbf16>
    tpu.vector_store %arg13[%c8_65, %c0_66], %139 {strides = array<i32>} : memref<16x256xbf16, #tpu.memory_space<vmem>>, vector<8x32xbf16>,
    %141 = vector.extract_strided_slice %137 {offsets = [8, 0], sizes = [8, 32], strides = [1, 1]} : vector<64x32xf32> to vector<8x32xf32>
    %142 = arith.truncf %141 : vector<8x32xf32> to vector<8x32xbf16>
    %c8_67 = arith.constant 8 : index
    %c32_68 = arith.constant 32 : index
    %143 = vector.load %arg13[%c8_67, %c32_68] : memref<16x256xbf16, #tpu.memory_space<vmem>>, vector<8x32xbf16>
    tpu.vector_store %arg13[%c8_67, %c32_68], %142 {strides = array<i32>} : memref<16x256xbf16, #tpu.memory_space<vmem>>, vector<8x32xbf16>,
    %144 = vector.extract_strided_slice %137 {offsets = [16, 0], sizes = [8, 32], strides = [1, 1]} : vector<64x32xf32> to vector<8x32xf32>
    %145 = arith.truncf %144 : vector<8x32xf32> to vector<8x32xbf16>
    %c8_69 = arith.constant 8 : index
    %c64_70 = arith.constant 64 : index
    %146 = vector.load %arg13[%c8_69, %c64_70] : memref<16x256xbf16, #tpu.memory_space<vmem>>, vector<8x32xbf16>
    tpu.vector_store %arg13[%c8_69, %c64_70], %145 {strides = array<i32>} : memref<16x256xbf16, #tpu.memory_space<vmem>>, vector<8x32xbf16>,
    %147 = vector.extract_strided_slice %137 {offsets = [24, 0], sizes = [8, 32], strides = [1, 1]} : vector<64x32xf32> to vector<8x32xf32>
    %148 = arith.truncf %147 : vector<8x32xf32> to vector<8x32xbf16>
    %c8_71 = arith.constant 8 : index
    %c96_72 = arith.constant 96 : index
    %149 = vector.load %arg13[%c8_71, %c96_72] : memref<16x256xbf16, #tpu.memory_space<vmem>>, vector<8x32xbf16>
    tpu.vector_store %arg13[%c8_71, %c96_72], %148 {strides = array<i32>} : memref<16x256xbf16, #tpu.memory_space<vmem>>, vector<8x32xbf16>,
    %150 = vector.extract_strided_slice %137 {offsets = [32, 0], sizes = [8, 32], strides = [1, 1]} : vector<64x32xf32> to vector<8x32xf32>
    %151 = arith.truncf %150 : vector<8x32xf32> to vector<8x32xbf16>
    %c8_73 = arith.constant 8 : index
    %c128_74 = arith.constant 128 : index
    %152 = vector.load %arg13[%c8_73, %c128_74] : memref<16x256xbf16, #tpu.memory_space<vmem>>, vector<8x32xbf16>
    tpu.vector_store %arg13[%c8_73, %c128_74], %151 {strides = array<i32>} : memref<16x256xbf16, #tpu.memory_space<vmem>>, vector<8x32xbf16>,
    %153 = vector.extract_strided_slice %137 {offsets = [40, 0], sizes = [8, 32], strides = [1, 1]} : vector<64x32xf32> to vector<8x32xf32>
    %154 = arith.truncf %153 : vector<8x32xf32> to vector<8x32xbf16>
    %c8_75 = arith.constant 8 : index
    %c160_76 = arith.constant 160 : index
    %155 = vector.load %arg13[%c8_75, %c160_76] : memref<16x256xbf16, #tpu.memory_space<vmem>>, vector<8x32xbf16>
    tpu.vector_store %arg13[%c8_75, %c160_76], %154 {strides = array<i32>} : memref<16x256xbf16, #tpu.memory_space<vmem>>, vector<8x32xbf16>,
    %156 = vector.extract_strided_slice %137 {offsets = [48, 0], sizes = [8, 32], strides = [1, 1]} : vector<64x32xf32> to vector<8x32xf32>
    %157 = arith.truncf %156 : vector<8x32xf32> to vector<8x32xbf16>
    %c8_77 = arith.constant 8 : index
    %c192_78 = arith.constant 192 : index
    %158 = vector.load %arg13[%c8_77, %c192_78] : memref<16x256xbf16, #tpu.memory_space<vmem>>, vector<8x32xbf16>
    tpu.vector_store %arg13[%c8_77, %c192_78], %157 {strides = array<i32>} : memref<16x256xbf16, #tpu.memory_space<vmem>>, vector<8x32xbf16>,
    %159 = vector.extract_strided_slice %137 {offsets = [56, 0], sizes = [8, 32], strides = [1, 1]} : vector<64x32xf32> to vector<8x32xf32>
    %160 = arith.truncf %159 : vector<8x32xf32> to vector<8x32xbf16>
    %c8_79 = arith.constant 8 : index
    %c224_80 = arith.constant 224 : index
    %161 = vector.load %arg13[%c8_79, %c224_80] : memref<16x256xbf16, #tpu.memory_space<vmem>>, vector<8x32xbf16>
    tpu.vector_store %arg13[%c8_79, %c224_80], %160 {strides = array<i32>} : memref<16x256xbf16, #tpu.memory_space<vmem>>, vector<8x32xbf16>,
    %c0_81 = arith.constant 0 : index
    %c0_82 = arith.constant 0 : index
    %162 = vector.load %arg13[%c0_81, %c0_82] : memref<16x256xbf16, #tpu.memory_space<vmem>>, vector<16x256xbf16>
    %c0_83 = arith.constant 0 : index
    %c0_84 = arith.constant 0 : index
    %163 = vector.load %arg7[%c0_83, %c0_84] : memref<256x32xbf16, #tpu.memory_space<vmem>>, vector<256x32xbf16>
    %cst_85 = arith.constant dense<0.000000e+00> : vector<16x32xf32>
    %164 = tpu.matmul %162, %163, %cst_85 {dimension_numbers = #tpu.dot_dimension_numbers<[1], [0], [0], [1], [0, 0, 1, 1], [], []>} : vector<16x256xbf16>, vector<256x32xbf16>, vector<16x32xf32> -> vector<16x32xf32>
    %c0_86 = arith.constant 0 : index
    %c0_87 = arith.constant 0 : index
    %165 = vector.load %arg8[%c0_86, %c0_87] : memref<32x128xbf16, #tpu.memory_space<vmem>>, vector<32x128xbf16>
    %cst_88 = arith.constant dense<0.000000e+00> : vector<16x128xf32>
    %166 = tpu.matmul %23, %165, %cst_88 {dimension_numbers = #tpu.dot_dimension_numbers<[1], [0], [0], [1], [0, 0, 1, 1], [], []>} : vector<16x32xbf16>, vector<32x128xbf16>, vector<16x128xf32> -> vector<16x128xf32>
    %c0_89 = arith.constant 0 : index
    %c0_90 = arith.constant 0 : index
    %167 = vector.load %arg9[%c0_89, %c0_90] : memref<32x128xbf16, #tpu.memory_space<vmem>>, vector<32x128xbf16>
    %cst_91 = arith.constant dense<0.000000e+00> : vector<16x128xf32>
    %168 = tpu.matmul %23, %167, %cst_91 {dimension_numbers = #tpu.dot_dimension_numbers<[1], [0], [0], [1], [0, 0, 1, 1], [], []>} : vector<16x32xbf16>, vector<32x128xbf16>, vector<16x128xf32> -> vector<16x128xf32>
    %169 = arith.negf %168 : vector<16x128xf32>
    %170 = math.exp %169 : vector<16x128xf32>
    %cst_92 = arith.constant 1.000000e+00 : f32
    %171 = vector.broadcast %cst_92 : f32 to vector<16x128xf32>
    %172 = arith.addf %171, %170 : vector<16x128xf32>
    %173 = arith.divf %171, %172 : vector<16x128xf32>
    %174 = arith.mulf %168, %173 : vector<16x128xf32>
    %175 = arith.mulf %174, %166 : vector<16x128xf32>
    %176 = arith.truncf %175 : vector<16x128xf32> to vector<16x128xbf16>
    %c0_93 = arith.constant 0 : index
    %c0_94 = arith.constant 0 : index
    %177 = vector.load %arg10[%c0_93, %c0_94] : memref<128x32xbf16, #tpu.memory_space<vmem>>, vector<128x32xbf16>
    %cst_95 = arith.constant dense<0.000000e+00> : vector<16x32xf32>
    %178 = tpu.matmul %176, %177, %cst_95 {dimension_numbers = #tpu.dot_dimension_numbers<[1], [0], [0], [1], [0, 0, 1, 1], [], []>} : vector<16x128xbf16>, vector<128x32xbf16>, vector<16x32xf32> -> vector<16x32xf32>
    %179 = arith.addf %164, %178 : vector<16x32xf32>
    %c0_96 = arith.constant 0 : index
    %c0_97 = arith.constant 0 : index
    %180 = vector.load %arg11[%c0_96, %c0_97] : memref<16x32xf32, #tpu.memory_space<vmem>>, vector<16x32xf32>
    tpu.vector_store %arg11[%c0_96, %c0_97], %179 {strides = array<i32>} : memref<16x32xf32, #tpu.memory_space<vmem>>, vector<16x32xf32>,
    return
  }
  func.func @transform_0(%arg0: i32) -> (i32, i32) {
    %c0_i32 = arith.constant 0 : i32
    %c0_i32_0 = arith.constant 0 : i32
    return %arg0, %c0_i32 : i32, i32
  }
  func.func @transform_1(%arg0: i32) -> (i32, i32) {
    %c0_i32 = arith.constant 0 : i32
    %c0_i32_0 = arith.constant 0 : i32
    %c0_i32_1 = arith.constant 0 : i32
    return %c0_i32, %c0_i32_0 : i32, i32
  }
  func.func @transform_2(%arg0: i32) -> (i32, i32) {
    %c0_i32 = arith.constant 0 : i32
    %c0_i32_0 = arith.constant 0 : i32
    %c0_i32_1 = arith.constant 0 : i32
    return %c0_i32, %c0_i32_0 : i32, i32
  }
  func.func @transform_3(%arg0: i32) -> (i32, i32) {
    %c0_i32 = arith.constant 0 : i32
    %c0_i32_0 = arith.constant 0 : i32
    %c0_i32_1 = arith.constant 0 : i32
    return %c0_i32, %c0_i32_0 : i32, i32
  }
  func.func @transform_4(%arg0: i32) -> (i32, i32) {
    %c0_i32 = arith.constant 0 : i32
    %c0_i32_0 = arith.constant 0 : i32
    %c0_i32_1 = arith.constant 0 : i32
    return %c0_i32, %c0_i32_0 : i32, i32
  }
  func.func @transform_5(%arg0: i32) -> (i32, i32) {
    %c0_i32 = arith.constant 0 : i32
    %c0_i32_0 = arith.constant 0 : i32
    %c0_i32_1 = arith.constant 0 : i32
    return %c0_i32, %c0_i32_0 : i32, i32
  }
  func.func @transform_6(%arg0: i32) -> (i32, i32) {
    %c0_i32 = arith.constant 0 : i32
    %c0_i32_0 = arith.constant 0 : i32
    %c0_i32_1 = arith.constant 0 : i32
    return %c0_i32, %c0_i32_0 : i32, i32
  }
  func.func @transform_7(%arg0: i32) -> (i32, i32) {
    %c0_i32 = arith.constant 0 : i32
    %c0_i32_0 = arith.constant 0 : i32
    %c0_i32_1 = arith.constant 0 : i32
    return %c0_i32, %c0_i32_0 : i32, i32
  }
  func.func @transform_8(%arg0: i32) -> (i32, i32) {
    %c0_i32 = arith.constant 0 : i32
    %c0_i32_0 = arith.constant 0 : i32
    %c0_i32_1 = arith.constant 0 : i32
    return %c0_i32, %c0_i32_0 : i32, i32
  }
  func.func @transform_9(%arg0: i32) -> (i32, i32) {
    %c0_i32 = arith.constant 0 : i32
    %c0_i32_0 = arith.constant 0 : i32
    %c0_i32_1 = arith.constant 0 : i32
    return %c0_i32, %c0_i32_0 : i32, i32
  }
  func.func @transform_10(%arg0: i32) -> (i32, i32) {
    %c0_i32 = arith.constant 0 : i32
    %c0_i32_0 = arith.constant 0 : i32
    return %arg0, %c0_i32 : i32, i32
  }
}

</mosaic_0001>

<bundles_post_ra>
// kernel: tpu_custom_call.1
= control target key start
LH: loop header
LB: loop body
LE: loop exit
PB: predicated region body
PF: predicated region fallthrough
CT: control target
= control target key end

     0   :  { %vm41_vm0 = vcmask 261120   ;;  %s1890_s0 = inlined_call_operand.vmem [shape: f32[16,32], index: 0, kind: input, shape index: {}]   ;;  %s1891_s1 = inlined_call_operand.vmem [shape: f32[1,32], index: 1, kind: input, shape index: {}]   ;;  %s1892_s2 = inlined_call_operand.vmem [shape: f32[1,32], index: 2, kind: input, shape index: {}]   ;;  %s1893_s3 = inlined_call_operand.vmem [shape: bf16[32,256], index: 3, kind: input, shape index: {}]   ;;  %s1894_s4 = inlined_call_operand.vmem [shape: bf16[32,32], index: 4, kind: input, shape index: {}]   ;;  %s1895_s5 = inlined_call_operand.vmem [shape: bf16[32,32], index: 5, kind: input, shape index: {}]   ;;  %s1896_s6 = inlined_call_operand.vmem [shape: bf16[256,32], index: 6, kind: input, shape index: {}]   ;;  %s1897_s7 = inlined_call_operand.vmem [shape: bf16[32,128], index: 7, kind: input, shape index: {}]   ;;  %s1898_s8 = inlined_call_operand.vmem [shape: bf16[32,128], index: 8, kind: input, shape index: {}]   ;;  %s1899_s9 = inlined_call_operand.vmem [shape: bf16[128,32], index: 9, kind: input, shape index: {}]   ;;  %s1900_s10 = inlined_call_operand.hbm [shape: f32[16,32], index: 10, kind: output, shape index: {}]  }
   0x1   :  { %v37_v0 = vld [vmem:[%s1890_s0] sm:$0xff] }
   0x2   :  { %v42_v1 = vsel %vm41_vm0, %v37_v0, 0.0 }
   0x3   :  { %15 = vsyncpa [#allocation5], 0  ;;  %43 = vadd.xlane.f32.xlu0 %v42_v1  ;;  %v38_v2 = vld [vmem:[%s1890_s0 + $0x8] sm:$0xff]  ;;  %v1521_v4 = vmov 32.0   ;;  %v1164_v21 = vld [vmem:[%s1893_s3 + $0x10] sm:$0xf] }
   0x4   :  { %v45_v3 = vsel %vm41_vm0, %v38_v2, 0.0  ;;  %1417 = vrcp.f32 %v1521_v4  ;;  %v1365_v22 = vld [vmem:[%s1893_s3 + $0x14] sm:$0xf0]  ;;  %v1367_v24 = vld [vmem:[%s1894_s4 + $0x8] sm:$0xff]  ;;  %v1156_v28 = vld [vmem:[%s1893_s3] sm:$0xf] }
   0x5   :  { %v1165_v23 = vor.u32 %v1365_v22, %v1164_v21  ;;  %v1369_v25 = vld [vmem:[%s1895_s5 + $0x8] sm:$0xff]  ;;  %181 = vmatpush.bf16.msra.mxu2 %v1367_v24  ;;  %v1366_v31 = vld [vmem:[%s1894_s4] sm:$0xff]  ;;  %v1364_v34 = vld [vmem:[%s1893_s3 + $0x14] sm:$0xf]  ;;  %vm220_vm8 = vcmask 257024   ;;  %s1524_s20 = smov 96  }
   0x6   :  { %211 = vmatpush.bf16.msra.mxu3 %v1369_v25  ;;  %v1363_v29 = vld [vmem:[%s1893_s3 + $0x4] sm:$0xf0]  ;;  %v1368_v32 = vld [vmem:[%s1895_s5] sm:$0xff]  ;;  %v1166_v35 = vld [vmem:[%s1893_s3 + $0x18] sm:$0xf0]  ;;  %vm413_vm9 = vcmask 1043456  }
   0x7   :  { %137 = vmatpush.bf16.msra.mxu1 %v1165_v23  ;;  %v1157_v30 = vor.u32 %v1363_v29, %v1156_v28  ;;  %v1169_v37 = vor.u32 %v1364_v34, %v1166_v35  ;;  %v1362_v38 = vld [vmem:[%s1893_s3 + $0x4] sm:$0xf]  ;;  %v1158_v39 = vld [vmem:[%s1893_s3 + $0x8] sm:$0xf0]  ;;  %v1415_v55 = vld [vmem:[%s1891_s1] ss:$0 sm:$0xff] }
   0x8   :  { %v1161_v41 = vor.u32 %v1362_v38, %v1158_v39  ;;  %v1416_v59 = vld [vmem:[%s1892_s2] ss:$0 sm:$0xff]  ;;  %s1522_s1 = smov 32   ;;  %s1523_s2 = smov 64   ;;  %vm324_vm10 = vcmask 64512   ;;  %vm469_vm14 = vcmask 519424  }
   0x9   :  { %182 = vmatpush.bf16.msra.mxu2 %v1366_v31  ;;  %s1142_s22 = sshll.u32 %s1900_s10, 4  ;;  %s1526_s23 = smov 128   ;;  %s1143_s22 = int_to_ptr.hbm [resolvable:$true] %s1142_s22 }
   0xa   :  { %v1418_v5 = vpop.eup %1417  ;;  %212 = vmatpush.bf16.msra.mxu3 %v1368_v32  ;;  %s1527_s24 = smov 8  }
   0xb   :  { %46 = vadd.xlane.f32.xlu0 %v45_v3  ;;  %v49_v6 = vmul.f32 32.0, %v1418_v5  ;;  %vm53_vm1 = vweird.f32 %v1418_v5  ;;  %138 = vmatpush.bf16.msra.mxu1 %v1157_v30 }
   0xd   :  { %v50_v7 = vsub.f32 1.0, %v49_v6 }
   0xf   :  { %v51_v8 = vmul.f32 %v1418_v5, %v50_v7  ;;  %151 = vmatpush.bf16.msrb.mxu1 %v1169_v37 }
  0x11   :  { %v52_v9 = vadd.f32 %v1418_v5, %v51_v8 }
  0x13   :  { %v54_v10 = vsel %vm53_vm1, %v1418_v5, %v52_v9  ;;  %152 = vmatpush.bf16.msrb.mxu1 %v1161_v41  ;;  %v1396_v41 = vld [vmem:[%s1897_s7] sm:$0xff] }
  0x76   :  { %v44_v11 = vpop.xlane.xlu0 %43 }
  0x77   :  { %v55_v12 = vmul.f32 %v54_v10, %v44_v11 }
  0x79   :  { %v57_v13 = vsub.f32 %v37_v0, %v55_v12 }
  0x7b   :  { %v59_v14 = vmul.f32 %v57_v13, %v57_v13 }
  0x7d   :  { %v61_v15 = vsel %vm41_vm0, %v59_v14, 0.0 }
  0x7e   :  { %62 = vadd.xlane.f32.xlu1 %v61_v15  ;;  %v47_v16 = vpop.xlane.xlu0 %46 }
  0x7f   :  { %v56_v17 = vmul.f32 %v54_v10, %v47_v16 }
  0x81   :  { %v58_v18 = vsub.f32 %v38_v2, %v56_v17 }
  0x83   :  { %v60_v19 = vmul.f32 %v58_v18, %v58_v18 }
  0x85   :  { %v64_v20 = vsel %vm41_vm0, %v60_v19, 0.0 }
  0x86   :  { %65 = vadd.xlane.f32.xlu1 %v64_v20 }
  0xf1   :  { %v63_v26 = vpop.xlane.xlu1 %62 }
  0xf2   :  { %v67_v27 = vmul.f32 %v63_v26, %v54_v10 }
  0xf4   :  { %v69_v33 = vadd.f32 1e-05, %v67_v27 }
  0xf6   :  { %1419 = vrsqrt.f32 %v69_v33  ;;  %vm77_vm3 = vweird.f32 %v69_v33 }
  0xf9   :  { %v66_v36 = vpop.xlane.xlu1 %65 }
  0xfa   :  { %v68_v40 = vmul.f32 %v66_v36, %v54_v10 }
  0xfc   :  { %v1420_v42 = vpop.eup %1419  ;;  %v70_v43 = vadd.f32 1e-05, %v68_v40  ;;  %v1397_v40 = vld [vmem:[%s1897_s7 + $0x8] sm:$0xff] }
  0xfd   :  { %v72_v44 = vmul.f32 %v1420_v42, %v69_v33  ;;  %vm78_vm2 = vweird.f32 %v1420_v42 }
  0xfe   :  { %1421 = vrsqrt.f32 %v70_v43  ;;  %vm79_vm4 = vmor %vm77_vm3, %vm78_vm2  ;;  %vm87_vm6 = vweird.f32 %v70_v43 }
  0xff   :  { %v73_v45 = vmul.f32 %v1420_v42, %v72_v44 }
 0x101   :  { %v74_v46 = vmul.f32 0.5, %v73_v45 }
 0x103   :  { %v75_v47 = vsub.f32 1.5, %v74_v46 }
 0x104   :  { %v1422_v48 = vpop.eup %1421 }
 0x105   :  { %v76_v49 = vmul.f32 %v1420_v42, %v75_v47  ;;  %v82_v50 = vmul.f32 %v1422_v48, %v70_v43  ;;  %vm88_vm5 = vweird.f32 %v1422_v48 }
 0x106   :  { %vm89_vm7 = vmor %vm87_vm6, %vm88_vm5  ;;  %vm476_vm5 = vcmask 781824   ;;  %vm483_vm6 = vcmask 1044224  }
 0x107   :  { %v83_v51 = vmul.f32 %v1422_v48, %v82_v50  ;;  %v80_v52 = vsel %vm79_vm4, %v1420_v42, %v76_v49 }
 0x108   :  { %v91_v56 = vmul.f32 %v80_v52, %v57_v13 }
 0x109   :  { %v84_v53 = vmul.f32 0.5, %v83_v51 }
 0x10a   :  { %v96_v60 = vmul.f32 %v1415_v55, %v91_v56 }
 0x10b   :  { %v85_v54 = vsub.f32 1.5, %v84_v53 }
 0x10c   :  { %v101_v63 = vadd.f32 %v1416_v59, %v96_v60 }
 0x10d   :  { %v86_v57 = vmul.f32 %v1422_v48, %v85_v54 }
 0x10f   :  { %v90_v58 = vsel %vm89_vm7, %v1422_v48, %v86_v57 }
 0x110   :  { %v92_v61 = vmul.f32 %v90_v58, %v58_v18 }
 0x112   :  { %v97_v62 = vmul.f32 %v1415_v55, %v92_v61 }
 0x114   :  { %v102_v0 = vadd.f32 %v1416_v59, %v97_v62 }
 0x116   :  { %v1635_v1 = vpack.c.bf16 %v102_v0, %v101_v63 }
 0x118   :  { %1170 = vmatmul.msk.bf16.vlgmr.msra.gmra.mxu1 %vm41_vm0, %v1635_v1  ;;  %1180 = vmatmul.msk.bf16.vlgmr.msra.gmra.mxu2 %vm41_vm0, %v1635_v1 }
 0x119   :  { %1189 = vmatmul.msk.bf16.vlgmr.msra.gmra.mxu3 %vm41_vm0, %v1635_v1 }
 0x128   :  { %1171 = vmatmul.msk.bf16.vlgmr.msrb.gmra.mxu1 %vm41_vm0, %v1635_v1 }
 0x195   :  { %v140_v2 = vpop.f32.mrf.mxu1 }
 0x196   :  { %v219_v3 = vpack.c.bf16 %v140_v2, %v140_v2 }
 0x198   :  { %221 = vst.msk [vmem:[#allocation2] sm:$0xf] %vm220_vm8, %v219_v3  ;;  %231 = vrot.lane.b32.xlu1 %v219_v3, %s1522_s1  ;;  %227 = vrot.lane.b32.xlu0 %v219_v3, %s1523_s2 }
 0x199   :  { %223 = vrot.lane.b32.xlu2 %v219_v3, %s1524_s20 }
 0x19b   :  { %v184_v4 = vpop.f32.mrf.mxu2 }
 0x19c   :  { %v250_v5 = vpack.c.bf16 %v184_v4, %v184_v4  ;;  %v214_v6 = vpop.f32.mrf.mxu3 }
 0x19d   :  { %v251_v7 = vpack.c.bf16 %v214_v6, %v214_v6  ;;  %v142_v8 = vpop.f32.mrf.mxu1 }
 0x19e   :  { %v505_v9 = vpack.c.bf16 %v142_v8, %v142_v8  ;;  %v293_v10 = vsel %vm41_vm0, %v250_v5, 0 }
 0x19f   :  { %v415_v11 = vsel %vm413_vm9, %v251_v7, 0  ;;  %302 = vmatpush.bf16.xpose.msra.mxu0 %v293_v10  ;;  %v1192_v12 = vld [vmem:[#allocation2] sm:$0xf] }
 0x1a0   :  { %424 = vmatpush.bf16.msra.mxu1 %v415_v11  ;;  %506 = vst.msk [vmem:[#allocation2] sm:$0xf] %vm220_vm8, %v505_v9 }
 0x1a1   :  { %508 = vrot.lane.b32.xlu2 %v505_v9, %s1524_s20 }
 0x1a3   :  { %v186_v13 = vpop.f32.mrf.mxu2 }
 0x1a4   :  { %v535_v14 = vpack.c.bf16 %v186_v13, %v186_v13  ;;  %v216_v15 = vpop.f32.mrf.mxu3 }
 0x1a5   :  { %v536_v16 = vpack.c.bf16 %v216_v15, %v216_v15  ;;  %v154_v17 = vpop.f32.mrf.mxu1 }
 0x1a6   :  { %v235_v18 = vpack.c.bf16 %v154_v17, %v154_v17  ;;  %v578_v19 = vsel %vm41_vm0, %v535_v14, 0 }
 0x1a7   :  { %587 = vmatpush.bf16.xpose.msrb.mxu2 %v578_v19  ;;  %v698_v20 = vsel %vm413_vm9, %v536_v16, 0  ;;  %841 = vmatpush.bf16.msrb.mxu0 %v1397_v40 }
 0x1a8   :  { %236 = vst.msk [vmem:[#allocation2 + $0x10] sm:$0xf] %vm220_vm8, %v235_v18  ;;  %707 = vmatpush.bf16.msrb.mxu3 %v698_v20  ;;  %246 = vrot.lane.b32.xlu1 %v235_v18, %s1522_s1 }
 0x1a9   :  { %512 = vrot.lane.b32.xlu2 %v505_v9, %s1523_s2 }
 0x1ab   :  { %842 = vmatpush.bf16.msrb.mxu0 %v1396_v41 }
 0x1ad   :  { %v156_v21 = vpop.f32.mrf.mxu1 }
 0x1ae   :  { %v520_v22 = vpack.c.bf16 %v156_v21, %v156_v21 }
 0x1af   :  { %v1200_v23 = vld [vmem:[#allocation2 + $0x10] sm:$0xf] }
 0x1b0   :  { %523 = vrot.lane.b32.xlu0 %v520_v22, %s1524_s20  ;;  %521 = vst.msk [vmem:[#allocation2 + $0x10] sm:$0xf] %vm220_vm8, %v520_v22 }
 0x1b1   :  { %516 = vrot.lane.b32.xlu2 %v505_v9, %s1522_s1 }
 0x1b8   :  { %527 = vrot.lane.b32.xlu0 %v520_v22, %s1523_s2 }
 0x1b9   :  { %238 = vrot.lane.b32.xlu2 %v235_v18, %s1524_s20 }
 0x1c1   :  { %242 = vrot.lane.b32.xlu2 %v235_v18, %s1523_s2 }
 0x1c9   :  { %531 = vrot.lane.b32.xlu2 %v520_v22, %s1522_s1 }
 0x1f3   :  { %v224_v24 = vpop.permute.xlu2 %223 }
 0x1f4   :  { %226 = vst.msk [vmem:[#allocation2 + $0x4] sm:$0xf] %vm220_vm8, %v224_v24 }
 0x1fb   :  { %v1370_v25 = vld [vmem:[#allocation2] sm:$0xf0]  ;;  %v509_v26 = vpop.permute.xlu2 %508 }
 0x1fc   :  { %511 = vst.msk [vmem:[#allocation2 + $0x4] sm:$0xf] %vm220_vm8, %v509_v26  ;;  %v1193_v27 = vor.u32 %v1370_v25, %v1192_v12 }
 0x1fe   :  { %1206 = vmatmul.msk.bf16.vlgmr.msra.gmra.mxu0 %vm41_vm0, %v1193_v27 }
 0x203   :  { %v513_v28 = vpop.permute.xlu2 %512  ;;  %v1374_v29 = vld [vmem:[#allocation2] sm:$0xff] }
 0x204   :  { %1230 = vmatmul.msk.bf16.vlgmr.msrb.gmra.mxu2 %vm41_vm0, %v1374_v29 }
 0x20a   :  { %v232_v30 = vpop.permute.xlu1 %231  ;;  %v228_v31 = vpop.permute.xlu0 %227 }
 0x20b   :  { %234 = vst.msk [vmem:[#allocation2 + $0xc] sm:$0xf] %vm220_vm8, %v232_v30  ;;  %v517_v32 = vpop.permute.xlu2 %516 }
 0x20c   :  { %230 = vst.msk [vmem:[#allocation2 + $0x8] sm:$0xf] %vm220_vm8, %v228_v31 }
 0x212   :  { %v1371_v33 = vld [vmem:[#allocation2 + $0x8] sm:$0xf0] }
 0x213   :  { %v1196_v34 = vld [vmem:[#allocation2 + $0x8] sm:$0xf]  ;;  %519 = vst.msk [vmem:[#allocation2 + $0xc] sm:$0xf] %vm220_vm8, %v517_v32  ;;  %v239_v35 = vpop.permute.xlu2 %238 }
 0x214   :  { %515 = vst.msk [vmem:[#allocation2 + $0x8] sm:$0xf] %vm220_vm8, %v513_v28  ;;  %v1197_v36 = vor.u32 %v1371_v33, %v1196_v34 }
 0x215   :  { %241 = vst.msk [vmem:[#allocation2 + $0x14] sm:$0xf] %vm220_vm8, %v239_v35 }
 0x216   :  { %1207 = vmatmul.msk.bf16.gmra.mxu0 %vm41_vm0, %v1197_v36 }
 0x21a   :  { %v247_v37 = vpop.permute.xlu1 %246 }
 0x21b   :  { %249 = vst.msk [vmem:[#allocation2 + $0x1c] sm:$0xf] %vm220_vm8, %v247_v37  ;;  %v243_v38 = vpop.permute.xlu2 %242  ;;  %v1375_v39 = vld [vmem:[#allocation2 + $0x8] sm:$0xff] }
 0x21c   :  { %245 = vst.msk [vmem:[#allocation2 + $0x18] sm:$0xf] %vm220_vm8, %v243_v38  ;;  %1231 = vmatmul.msk.bf16.gmra.mxu2 %vm41_vm0, %v1375_v39  ;;  %v1372_v42 = vld [vmem:[#allocation2 + $0x10] sm:$0xf0] }
 0x21d   :  { %v1201_v46 = vor.u32 %v1372_v42, %v1200_v23 }
 0x222   :  { %v1373_v43 = vld [vmem:[#allocation2 + $0x18] sm:$0xf0]  ;;  %v524_v44 = vpop.permute.xlu0 %523 }
 0x223   :  { %v532_v45 = vpop.permute.xlu2 %531  ;;  %526 = vst.msk [vmem:[#allocation2 + $0x14] sm:$0xf] %vm220_vm8, %v524_v44  ;;  %v1204_v47 = vld [vmem:[#allocation2 + $0x18] sm:$0xf] }
 0x224   :  { %534 = vst.msk [vmem:[#allocation2 + $0x1c] sm:$0xf] %vm220_vm8, %v532_v45  ;;  %v1205_v50 = vor.u32 %v1373_v43, %v1204_v47 }
 0x226   :  { %1208 = vmatmul.msk.bf16.gmra.mxu0 %vm41_vm0, %v1201_v46 }
 0x22a   :  { %v528_v48 = vpop.permute.xlu0 %527  ;;  %v1376_v49 = vld [vmem:[#allocation2 + $0x10] sm:$0xff] }
 0x22b   :  { %530 = vst.msk [vmem:[#allocation2 + $0x18] sm:$0xf] %vm220_vm8, %v528_v48 }
 0x22c   :  { %1232 = vmatmul.msk.bf16.gmra.mxu2 %vm41_vm0, %v1376_v49 }
 0x232   :  { %v1377_v51 = vld [vmem:[#allocation2 + $0x18] sm:$0xff] }
 0x236   :  { %1209 = vmatmul.msk.bf16.gmra.mxu0 %vm41_vm0, %v1205_v50 }
 0x23c   :  { %1233 = vmatmul.msk.bf16.gmra.mxu2 %vm41_vm0, %v1377_v51 }
 0x246   :  { %1246 = vmatmul.msk.bf16.vlgmr.msrb.gmra.mxu0 %vm41_vm0, %v1635_v1 }
 0x27b   :  { %v304_v52 = vpop.f32.mrf.mxu0 }
 0x27c   :  { %v325_v53 = vsel %vm324_vm10, %v304_v52, -inf }
 0x27d   :  { %326 = vmax.xlane.f32.xlu2 %v325_v53 }
 0x283   :  { %v306_v56 = vpop.f32.mrf.mxu0 }
 0x284   :  { %v328_v58 = vsel %vm324_vm10, %v306_v56, -inf }
 0x287   :  { %v589_v54 = vpop.f32.mrf.mxu2 }
 0x288   :  { %v609_v55 = vsel %vm324_vm10, %v589_v54, -inf }
 0x289   :  { %610 = vmax.xlane.f32.xlu1 %v609_v55 }
 0x28f   :  { %v591_v57 = vpop.f32.mrf.mxu2 }
 0x290   :  { %v612_v59 = vsel %vm324_vm10, %v591_v57, -inf }
 0x291   :  { %329 = vmax.xlane.f32.xlu1 %v328_v58  ;;  %613 = vmax.xlane.f32.xlu0 %v612_v59 }
 0x293   :  { %v309_v60 = vpop.f32.mrf.mxu0 }
 0x294   :  { %v331_v61 = vsel %vm324_vm10, %v309_v60, -inf }
 0x299   :  { %332 = vmax.xlane.f32.xlu1 %v331_v61 }
 0x29b   :  { %v1698_v62 = vpop.f32.mrf.mxu0 }
 0x29c   :  { %v334_v5 = vsel %vm324_vm10, %v1698_v62, -inf }
 0x29f   :  { %v1700_v63 = vpop.f32.mrf.mxu2 }
 0x2a0   :  { %v615_v0 = vsel %vm324_vm10, %v1700_v63, -inf }
 0x2a1   :  { %616 = vmax.xlane.f32.xlu0 %v615_v0 }
 0x2a3   :  { %v1704_v2 = vpop.f32.mrf.mxu0 }
 0x2a4   :  { %v337_v7 = vsel %vm324_vm10, %v1704_v2, -inf }
 0x2a7   :  { %v1706_v3 = vpop.f32.mrf.mxu2 }
 0x2a8   :  { %v618_v4 = vsel %vm324_vm10, %v1706_v3, -inf }
 0x2a9   :  { %619 = vmax.xlane.f32.xlu2 %v618_v4  ;;  %335 = vmax.xlane.f32.xlu0 %v334_v5 }
 0x2ab   :  { %v1718_v9 = vpop.f32.mrf.mxu0 }
 0x2ac   :  { %v340_v11 = vsel %vm324_vm10, %v1718_v9, -inf }
 0x2af   :  { %v1712_v6 = vpop.f32.mrf.mxu2 }
 0x2b0   :  { %v621_v8 = vsel %vm324_vm10, %v1712_v6, -inf }
 0x2b1   :  { %338 = vmax.xlane.f32.xlu0 %v337_v7  ;;  %622 = vmax.xlane.f32.xlu2 %v621_v8  ;;  %v1399_v8 = vld [vmem:[%s1898_s8 + $0x8] sm:$0xff] }
 0x2b2   :  { %871 = vmatpush.bf16.msrb.mxu1 %v1399_v8 }
 0x2b3   :  { %v1726_v13 = vpop.f32.mrf.mxu0 }
 0x2b4   :  { %v343_v15 = vsel %vm324_vm10, %v1726_v13, -inf }
 0x2b7   :  { %v1720_v10 = vpop.f32.mrf.mxu2 }
 0x2b8   :  { %v624_v12 = vsel %vm324_vm10, %v1720_v10, -inf }
 0x2b9   :  { %341 = vmax.xlane.f32.xlu2 %v340_v11  ;;  %625 = vmax.xlane.f32.xlu1 %v624_v12 }
 0x2bb   :  { %v1734_v17 = vpop.f32.mrf.mxu0 }
 0x2bc   :  { %v346_v19 = vsel %vm324_vm10, %v1734_v17, -inf }
 0x2bf   :  { %v1728_v14 = vpop.f32.mrf.mxu2 }
 0x2c0   :  { %v627_v16 = vsel %vm324_vm10, %v1728_v14, -inf }
 0x2c1   :  { %344 = vmax.xlane.f32.xlu2 %v343_v15  ;;  %628 = vmax.xlane.f32.xlu1 %v627_v16  ;;  %v1398_v16 = vld [vmem:[%s1898_s8] sm:$0xff] }
 0x2c2   :  { %872 = vmatpush.bf16.msrb.mxu1 %v1398_v16 }
 0x2c7   :  { %v1736_v18 = vpop.f32.mrf.mxu2 }
 0x2c8   :  { %v630_v20 = vsel %vm324_vm10, %v1736_v18, -inf }
 0x2c9   :  { %347 = vmax.xlane.f32.xlu1 %v346_v19  ;;  %631 = vmax.xlane.f32.xlu0 %v630_v20 }
 0x2f0   :  { %v327_v21 = vpop.xlane.xlu2 %326 }
 0x2f1   :  { %v349_v22 = vsub.f32 %v304_v52, %v327_v21 }
 0x2f3   :  { %v357_v23 = vmul.f32 1.442695, %v349_v22 }
 0x2f5   :  { %1423 = vpow2.f32 %v357_v23 }
 0x2fb   :  { %v1424_v24 = vpop.eup %1423 }
 0x2fc   :  { %v373_v25 = vsel %vm324_vm10, %v1424_v24, 0.0  ;;  %v611_v26 = vpop.xlane.xlu1 %610 }
 0x2fd   :  { %374 = vadd.xlane.f32.xlu0 %v373_v25  ;;  %v633_v27 = vsub.f32 %v589_v54, %v611_v26 }
 0x2ff   :  { %v641_v28 = vmul.f32 1.442695, %v633_v27 }
 0x301   :  { %1425 = vpow2.f32 %v641_v28 }
 0x304   :  { %v330_v29 = vpop.xlane.xlu1 %329  ;;  %v614_v30 = vpop.xlane.xlu0 %613 }
 0x305   :  { %v350_v31 = vsub.f32 %v306_v56, %v330_v29  ;;  %v634_v32 = vsub.f32 %v591_v57, %v614_v30 }
 0x307   :  { %v1426_v33 = vpop.eup %1425  ;;  %v359_v34 = vmul.f32 1.442695, %v350_v31  ;;  %v643_v35 = vmul.f32 1.442695, %v634_v32 }
 0x308   :  { %v657_v36 = vsel %vm324_vm10, %v1426_v33, 0.0 }
 0x309   :  { %1427 = vpow2.f32 %v359_v34  ;;  %658 = vadd.xlane.f32.xlu2 %v657_v36 }
 0x30a   :  { %1429 = vpow2.f32 %v643_v35 }
 0x30c   :  { %v333_v37 = vpop.xlane.xlu1 %332 }
 0x30d   :  { %v351_v38 = vsub.f32 %v309_v60, %v333_v37 }
 0x30f   :  { %v1428_v39 = vpop.eup %1427  ;;  %v361_v40 = vmul.f32 1.442695, %v351_v38 }
 0x310   :  { %v1430_v41 = vpop.eup %1429  ;;  %v397_v42 = vpack.c.bf16 %v1428_v39, %v1424_v24  ;;  %v376_v43 = vsel %vm324_vm10, %v1428_v39, 0.0 }
 0x311   :  { %1431 = vpow2.f32 %v361_v40  ;;  %v660_v44 = vsel %vm324_vm10, %v1430_v41, 0.0  ;;  %377 = vadd.xlane.f32.xlu0 %v376_v43  ;;  %v681_v45 = vpack.c.bf16 %v1430_v41, %v1426_v33 }
 0x312   :  { %661 = vadd.xlane.f32.xlu2 %v660_v44  ;;  %1210 = vmatmul.msk.bf16.vlgmr.msra.gmra.mxu1 %vm324_vm10, %v397_v42 }
 0x313   :  { %1234 = vmatmul.msk.bf16.vlgmr.msrb.gmra.mxu3 %vm324_vm10, %v681_v45 }
 0x314   :  { %v617_v46 = vpop.xlane.xlu0 %616 }
 0x315   :  { %v635_v47 = vsub.f32 %v1700_v63, %v617_v46 }
 0x317   :  { %v1432_v48 = vpop.eup %1431  ;;  %v645_v49 = vmul.f32 1.442695, %v635_v47 }
 0x318   :  { %v379_v50 = vsel %vm324_vm10, %v1432_v48, 0.0 }
 0x319   :  { %1433 = vpow2.f32 %v645_v49  ;;  %380 = vadd.xlane.f32.xlu1 %v379_v50 }
 0x31c   :  { %v620_v51 = vpop.xlane.xlu2 %619  ;;  %v336_v52 = vpop.xlane.xlu0 %335 }
 0x31d   :  { %v636_v53 = vsub.f32 %v1706_v3, %v620_v51  ;;  %v352_v54 = vsub.f32 %v1698_v62, %v336_v52 }
 0x31f   :  { %v1434_v55 = vpop.eup %1433  ;;  %v647_v56 = vmul.f32 1.442695, %v636_v53  ;;  %v363_v57 = vmul.f32 1.442695, %v352_v54 }
 0x320   :  { %v663_v58 = vsel %vm324_vm10, %v1434_v55, 0.0 }
 0x321   :  { %1435 = vpow2.f32 %v647_v56  ;;  %664 = vadd.xlane.f32.xlu0 %v663_v58 }
 0x322   :  { %1437 = vpow2.f32 %v363_v57 }
 0x324   :  { %v339_v59 = vpop.xlane.xlu0 %338  ;;  %v623_v60 = vpop.xlane.xlu2 %622 }
 0x325   :  { %v353_v61 = vsub.f32 %v1704_v2, %v339_v59  ;;  %v637_v5 = vsub.f32 %v1712_v6, %v623_v60 }
 0x327   :  { %v1436_v63 = vpop.eup %1435  ;;  %v365_v0 = vmul.f32 1.442695, %v353_v61  ;;  %v649_v2 = vmul.f32 1.442695, %v637_v5 }
 0x328   :  { %v1438_v4 = vpop.eup %1437  ;;  %v682_v3 = vpack.c.bf16 %v1436_v63, %v1434_v55  ;;  %v666_v29 = vsel %vm324_vm10, %v1436_v63, 0.0 }
 0x329   :  { %1439 = vpow2.f32 %v365_v0  ;;  %v382_v62 = vsel %vm324_vm10, %v1438_v4, 0.0  ;;  %v398_v7 = vpack.c.bf16 %v1438_v4, %v1432_v48 }
 0x32a   :  { %383 = vadd.xlane.f32.xlu2 %v382_v62  ;;  %1235 = vmatmul.msk.bf16.gmra.mxu3 %vm324_vm10, %v682_v3  ;;  %1441 = vpow2.f32 %v649_v2 }
 0x32b   :  { %1211 = vmatmul.msk.bf16.gmra.mxu1 %vm324_vm10, %v398_v7 }
 0x32c   :  { %v342_v11 = vpop.xlane.xlu2 %341  ;;  %v626_v12 = vpop.xlane.xlu1 %625 }
 0x32d   :  { %v354_v15 = vsub.f32 %v1718_v9, %v342_v11  ;;  %v638_v6 = vsub.f32 %v1720_v10, %v626_v12 }
 0x32f   :  { %v1440_v19 = vpop.eup %1439  ;;  %v367_v20 = vmul.f32 1.442695, %v354_v15  ;;  %v651_v21 = vmul.f32 1.442695, %v638_v6 }
 0x330   :  { %v385_v22 = vsel %vm324_vm10, %v1440_v19, 0.0  ;;  %v1442_v10 = vpop.eup %1441 }
 0x331   :  { %1443 = vpow2.f32 %v367_v20  ;;  %386 = vadd.xlane.f32.xlu1 %v385_v22  ;;  %v669_v41 = vsel %vm324_vm10, %v1442_v10, 0.0 }
 0x332   :  { %1445 = vpow2.f32 %v651_v21 }
 0x334   :  { %v345_v23 = vpop.xlane.xlu2 %344  ;;  %v629_v24 = vpop.xlane.xlu1 %628 }
 0x335   :  { %v355_v9 = vsub.f32 %v1726_v13, %v345_v23  ;;  %v639_v27 = vsub.f32 %v1728_v14, %v629_v24 }
 0x337   :  { %v1444_v25 = vpop.eup %1443  ;;  %v369_v26 = vmul.f32 1.442695, %v355_v9  ;;  %v653_v34 = vmul.f32 1.442695, %v639_v27 }
 0x338   :  { %v1446_v28 = vpop.eup %1445  ;;  %v388_v30 = vsel %vm324_vm10, %v1444_v25, 0.0  ;;  %v399_v31 = vpack.c.bf16 %v1444_v25, %v1440_v19 }
 0x339   :  { %1447 = vpow2.f32 %v369_v26  ;;  %v672_v32 = vsel %vm324_vm10, %v1446_v28, 0.0  ;;  %667 = vadd.xlane.f32.xlu1 %v666_v29  ;;  %389 = vadd.xlane.f32.xlu0 %v388_v30  ;;  %v683_v33 = vpack.c.bf16 %v1446_v28, %v1442_v10 }
 0x33a   :  { %673 = vadd.xlane.f32.xlu2 %v672_v32  ;;  %1449 = vpow2.f32 %v653_v34 }
 0x33b   :  { %1212 = vmatmul.msk.bf16.gmra.mxu1 %vm324_vm10, %v399_v31  ;;  %1236 = vmatmul.msk.bf16.gmra.mxu3 %vm324_vm10, %v683_v33 }
 0x33c   :  { %v348_v13 = vpop.xlane.xlu1 %347  ;;  %v632_v14 = vpop.xlane.xlu0 %631 }
 0x33d   :  { %v356_v35 = vsub.f32 %v1734_v17, %v348_v13  ;;  %v640_v36 = vsub.f32 %v1736_v18, %v632_v14 }
 0x33f   :  { %v1448_v37 = vpop.eup %1447  ;;  %v371_v38 = vmul.f32 1.442695, %v356_v35  ;;  %v655_v39 = vmul.f32 1.442695, %v640_v36 }
 0x340   :  { %v391_v40 = vsel %vm324_vm10, %v1448_v37, 0.0  ;;  %v1450_v42 = vpop.eup %1449 }
 0x341   :  { %1451 = vpow2.f32 %v371_v38  ;;  %392 = vadd.xlane.f32.xlu1 %v391_v40  ;;  %670 = vadd.xlane.f32.xlu0 %v669_v41  ;;  %v675_v17 = vsel %vm324_vm10, %v1450_v42, 0.0 }
 0x342   :  { %1453 = vpow2.f32 %v655_v39 }
 0x347   :  { %v1452_v43 = vpop.eup %1451 }
 0x348   :  { %v1454_v44 = vpop.eup %1453  ;;  %v394_v45 = vsel %vm324_vm10, %v1452_v43, 0.0  ;;  %v400_v18 = vpack.c.bf16 %v1452_v43, %v1448_v37  ;;  %v1407_v43 = vld [vmem:[%s1899_s9 + $0x38] sm:$0xff] }
 0x349   :  { %395 = vadd.xlane.f32.xlu2 %v394_v45  ;;  %676 = vadd.xlane.f32.xlu0 %v675_v17  ;;  %v678_v46 = vsel %vm324_vm10, %v1454_v44, 0.0  ;;  %v684_v47 = vpack.c.bf16 %v1454_v44, %v1450_v42 }
 0x34a   :  { %679 = vadd.xlane.f32.xlu1 %v678_v46  ;;  %986 = vmatpush.bf16.msra.mxu2 %v1407_v43 }
 0x34b   :  { %1213 = vmatmul.msk.bf16.gmra.mxu1 %vm324_vm10, %v400_v18  ;;  %1237 = vmatmul.msk.bf16.gmra.mxu3 %vm324_vm10, %v684_v47  ;;  %v1406_v47 = vld [vmem:[%s1899_s9 + $0x30] sm:$0xff] }
 0x34e   :  { %987 = vmatpush.bf16.msra.mxu2 %v1406_v47  ;;  %v1384_v47 = vld [vmem:[%s1896_s6 + $0x20] sm:$0xff] }
 0x35b   :  { %1255 = vmatmul.msk.bf16.vlgmr.msrb.gmra.mxu1 %vm41_vm0, %v1635_v1 }
 0x370   :  { %v375_v48 = vpop.xlane.xlu0 %374 }
 0x371   :  { %1455 = vrcp.f32 %v375_v48 }
 0x377   :  { %v1456_v51 = vpop.eup %1455 }
 0x37c   :  { %v659_v49 = vpop.xlane.xlu2 %658 }
 0x37d   :  { %1457 = vrcp.f32 %v659_v49 }
 0x383   :  { %v1458_v56 = vpop.eup %1457 }
 0x384   :  { %v378_v50 = vpop.xlane.xlu0 %377 }
 0x385   :  { %1459 = vrcp.f32 %v378_v50  ;;  %v662_v55 = vpop.xlane.xlu2 %661 }
 0x386   :  { %1461 = vrcp.f32 %v662_v55 }
 0x38b   :  { %v1460_v58 = vpop.eup %1459 }
 0x38c   :  { %v381_v0 = vpop.xlane.xlu1 %380  ;;  %v1462_v4 = vpop.eup %1461 }
 0x38d   :  { %1463 = vrcp.f32 %v381_v0  ;;  %v1403_v0 = vld [vmem:[%s1899_s9 + $0x18] sm:$0xff] }
 0x38f   :  { %v426_v52 = vpop.f32.mrf.mxu1 }
 0x390   :  { %v454_v53 = vmul.f32 %v1456_v51, %v426_v52 }
 0x392   :  { %v462_v54 = vpack.c.bf16 %v454_v53, %v454_v53  ;;  %v1405_v53 = vld [vmem:[%s1899_s9 + $0x28] sm:$0xff] }
 0x393   :  { %v1464_v11 = vpop.eup %1463  ;;  %988 = vmatpush.bf16.msra.mxu2 %v1405_v53 }
 0x394   :  { %463 = vst.msk [vmem:[#allocation3] sm:$0xf] %vm220_vm8, %v462_v54  ;;  %v665_v7 = vpop.xlane.xlu0 %664 }
 0x395   :  { %1465 = vrcp.f32 %v665_v7 }
 0x396   :  { %v709_v57 = vpop.f32.mrf.mxu3 }
 0x397   :  { %v737_v59 = vmul.f32 %v1458_v56, %v709_v57  ;;  %v428_v60 = vpop.f32.mrf.mxu1 }
 0x398   :  { %v455_v1 = vmul.f32 %v1460_v58, %v428_v60  ;;  %v1404_v58 = vld [vmem:[%s1899_s9 + $0x20] sm:$0xff] }
 0x399   :  { %v745_v61 = vpack.c.bf16 %v737_v59, %v737_v59  ;;  %989 = vmatpush.bf16.msra.mxu2 %v1404_v58  ;;  %v1393_v58 = vld [vmem:[%s1896_s6 + $0x68] sm:$0xff] }
 0x39a   :  { %v464_v63 = vpack.c.bf16 %v455_v1, %v455_v1 }
 0x39b   :  { %746 = vst.msk [vmem:[#allocation3 + $0x8] sm:$0xf] %vm220_vm8, %v745_v61  ;;  %v1466_v20 = vpop.eup %1465 }
 0x39c   :  { %466 = vrot.lane.b32.xlu2 %v464_v63, %s1522_s1 }
 0x39d   :  { %v384_v2 = vpop.xlane.xlu2 %383  ;;  %990 = vmatpush.bf16.msra.mxu2 %v1403_v0  ;;  %v1389_v0 = vld [vmem:[%s1896_s6 + $0x48] sm:$0xff] }
 0x39e   :  { %v711_v5 = vpop.f32.mrf.mxu3  ;;  %1467 = vrcp.f32 %v384_v2 }
 0x39f   :  { %v738_v3 = vmul.f32 %v1462_v4, %v711_v5 }
 0x3a1   :  { %v747_v62 = vpack.c.bf16 %v738_v3, %v738_v3 }
 0x3a3   :  { %749 = vrot.lane.b32.xlu1 %v747_v62, %s1522_s1  ;;  %v1402_v62 = vld [vmem:[%s1899_s9 + $0x10] sm:$0xff] }
 0x3a4   :  { %v387_v8 = vpop.xlane.xlu1 %386  ;;  %v1468_v23 = vpop.eup %1467  ;;  %991 = vmatpush.bf16.msra.mxu2 %v1402_v62 }
 0x3a8   :  { %v431_v12 = vpop.f32.mrf.mxu1 }
 0x3a9   :  { %v456_v15 = vmul.f32 %v1464_v11, %v431_v12  ;;  %v1401_v11 = vld [vmem:[%s1899_s9 + $0x8] sm:$0xff]  ;;  %v1400_v12 = vld [vmem:[%s1899_s9] sm:$0xff] }
 0x3aa   :  { %992 = vmatpush.bf16.msra.mxu2 %v1401_v11 }
 0x3ab   :  { %v471_v6 = vpack.c.bf16 %v456_v15, %v456_v15 }
 0x3ac   :  { %v668_v16 = vpop.xlane.xlu1 %667  ;;  %v390_v19 = vpop.xlane.xlu0 %389 }
 0x3ad   :  { %473 = vrot.lane.b32.xlu0 %v471_v6, %s1523_s2  ;;  %v714_v21 = vpop.f32.mrf.mxu3  ;;  %1469 = vrcp.f32 %v668_v16  ;;  %v674_v13 = vpop.xlane.xlu2 %673 }
 0x3ae   :  { %v739_v22 = vmul.f32 %v1466_v20, %v714_v21  ;;  %1471 = vrcp.f32 %v387_v8  ;;  %993 = vmatpush.bf16.msra.mxu2 %v1400_v12 }
 0x3b0   :  { %v753_v24 = vpack.c.bf16 %v739_v22, %v739_v22  ;;  %v433_v9 = vpop.f32.mrf.mxu1 }
 0x3b1   :  { %v457_v10 = vmul.f32 %v1468_v23, %v433_v9 }
 0x3b2   :  { %755 = vrot.lane.b32.xlu2 %v753_v24, %s1523_s2  ;;  %v1387_v24 = vld [vmem:[%s1896_s6 + $0x38] sm:$0xff] }
 0x3b3   :  { %v478_v25 = vpack.c.bf16 %v457_v10, %v457_v10  ;;  %v1470_v26 = vpop.eup %1469  ;;  %1106 = vmatpush.bf16.msra.mxu3 %v1387_v24 }
 0x3b4   :  { %v671_v27 = vpop.xlane.xlu0 %670  ;;  %v1472_v30 = vpop.eup %1471 }
 0x3b5   :  { %480 = vrot.lane.b32.xlu0 %v478_v25, %s1524_s20  ;;  %v716_v28 = vpop.f32.mrf.mxu3  ;;  %1473 = vrcp.f32 %v671_v27  ;;  %v393_v36 = vpop.xlane.xlu1 %392 }
 0x3b6   :  { %v740_v29 = vmul.f32 %v1470_v26, %v716_v28  ;;  %1475 = vrcp.f32 %v390_v19 }
 0x3b7   :  { %1477 = vrcp.f32 %v674_v13 }
 0x3b8   :  { %v759_v31 = vpack.c.bf16 %v740_v29, %v740_v29  ;;  %v436_v32 = vpop.f32.mrf.mxu1  ;;  %1479 = vrcp.f32 %v393_v36 }
 0x3b9   :  { %v458_v33 = vmul.f32 %v1472_v30, %v436_v32  ;;  %v844_v30 = vpop.f32.mrf.mxu0 }
 0x3ba   :  { %761 = vrot.lane.b32.xlu1 %v759_v31, %s1524_s20 }
 0x3bb   :  { %v485_v34 = vpack.c.bf16 %v458_v33, %v458_v33  ;;  %v1474_v14 = vpop.eup %1473 }
 0x3bc   :  { %v1476_v38 = vpop.eup %1475  ;;  %v677_v44 = vpop.xlane.xlu0 %676 }
 0x3bd   :  { %486 = vst.msk [vmem:[#allocation3 + $0x4] sm:$0xf] %vm220_vm8, %v485_v34  ;;  %v1478_v45 = vpop.eup %1477  ;;  %v396_v18 = vpop.xlane.xlu2 %395  ;;  %1481 = vrcp.f32 %v677_v44 }
 0x3be   :  { %v719_v35 = vpop.f32.mrf.mxu3  ;;  %v1480_v48 = vpop.eup %1479  ;;  %1483 = vrcp.f32 %v396_v18  ;;  %v1385_v18 = vld [vmem:[%s1896_s6 + $0x28] sm:$0xff] }
 0x3bf   :  { %v741_v37 = vmul.f32 %v1474_v14, %v719_v35  ;;  %v680_v54 = vpop.xlane.xlu1 %679  ;;  %v1386_v14 = vld [vmem:[%s1896_s6 + $0x30] sm:$0xff] }
 0x3c0   :  { %v438_v39 = vpop.f32.mrf.mxu1  ;;  %1485 = vrcp.f32 %v680_v54  ;;  %1107 = vmatpush.bf16.msra.mxu3 %v1386_v14  ;;  %v1395_v54 = vld [vmem:[%s1896_s6 + $0x78] sm:$0xff] }
 0x3c1   :  { %v765_v40 = vpack.c.bf16 %v741_v37, %v741_v37  ;;  %v459_v41 = vmul.f32 %v1476_v38, %v438_v39  ;;  %v846_v44 = vpop.f32.mrf.mxu0  ;;  %1120 = vmatpush.bf16.msra.mxu0 %v1395_v54 }
 0x3c3   :  { %766 = vst.msk [vmem:[#allocation3 + $0xc] sm:$0xf] %vm220_vm8, %v765_v40  ;;  %v487_v42 = vpack.c.bf16 %v459_v41, %v459_v41  ;;  %v1482_v55 = vpop.eup %1481 }
 0x3c4   :  { %v1484_v59 = vpop.eup %1483  ;;  %1108 = vmatpush.bf16.msra.mxu3 %v1385_v18 }
 0x3c5   :  { %489 = vrot.lane.b32.xlu2 %v487_v42, %s1522_s1 }
 0x3c6   :  { %v721_v17 = vpop.f32.mrf.mxu3  ;;  %v1486_v4 = vpop.eup %1485 }
 0x3c7   :  { %v742_v46 = vmul.f32 %v1478_v45, %v721_v17 }
 0x3c8   :  { %v441_v49 = vpop.f32.mrf.mxu1  ;;  %1109 = vmatpush.bf16.msra.mxu3 %v1384_v47 }
 0x3c9   :  { %v767_v50 = vpack.c.bf16 %v742_v46, %v742_v46  ;;  %v460_v51 = vmul.f32 %v1480_v48, %v441_v49  ;;  %v1383_v48 = vld [vmem:[%s1896_s6 + $0x18] sm:$0xff]  ;;  %v1382_v49 = vld [vmem:[%s1896_s6 + $0x10] sm:$0xff] }
 0x3cb   :  { %v493_v52 = vpack.c.bf16 %v460_v51, %v460_v51  ;;  %769 = vrot.lane.b32.xlu0 %v767_v50, %s1522_s1  ;;  %v1381_v50 = vld [vmem:[%s1896_s6 + $0x8] sm:$0xff]  ;;  %v1380_v51 = vld [vmem:[%s1896_s6] sm:$0xff] }
 0x3cc   :  { %1110 = vmatpush.bf16.msra.mxu3 %v1383_v48 }
 0x3cd   :  { %495 = vrot.lane.b32.xlu1 %v493_v52, %s1523_s2 }
 0x3ce   :  { %v724_v56 = vpop.f32.mrf.mxu3 }
 0x3cf   :  { %v743_v57 = vmul.f32 %v1482_v55, %v724_v56  ;;  %v1394_v55 = vld [vmem:[%s1896_s6 + $0x70] sm:$0xff] }
 0x3d0   :  { %v443_v60 = vpop.f32.mrf.mxu1  ;;  %1111 = vmatpush.bf16.msra.mxu3 %v1382_v49  ;;  %1121 = vmatpush.bf16.msra.mxu0 %v1394_v55 }
 0x3d1   :  { %v773_v1 = vpack.c.bf16 %v743_v57, %v743_v57  ;;  %v461_v61 = vmul.f32 %v1484_v59, %v443_v60  ;;  %v1392_v59 = vld [vmem:[%s1896_s6 + $0x60] sm:$0xff] }
 0x3d3   :  { %v499_v63 = vpack.c.bf16 %v461_v61, %v461_v61  ;;  %775 = vrot.lane.b32.xlu2 %v773_v1, %s1523_s2  ;;  %v1391_v1 = vld [vmem:[%s1896_s6 + $0x58] sm:$0xff]  ;;  %v1390_v61 = vld [vmem:[%s1896_s6 + $0x50] sm:$0xff] }
 0x3d4   :  { %1112 = vmatpush.bf16.msra.mxu3 %v1381_v50  ;;  %1122 = vmatpush.bf16.msra.mxu0 %v1393_v58 }
 0x3d5   :  { %501 = vrot.lane.b32.xlu0 %v499_v63, %s1524_s20 }
 0x3d6   :  { %v726_v5 = vpop.f32.mrf.mxu3 }
 0x3d7   :  { %v744_v3 = vmul.f32 %v1486_v4, %v726_v5  ;;  %v1388_v4 = vld [vmem:[%s1896_s6 + $0x40] sm:$0xff]  ;;  %s1525_s6 = smov [#allocation4]  }
 0x3d8   :  { %v874_v7 = vpop.f32.mrf.mxu1  ;;  %1113 = vmatpush.bf16.msra.mxu3 %v1380_v51  ;;  %1123 = vmatpush.bf16.msra.mxu0 %v1392_v59  ;;  %s1140_s2 = sshll.u32 %s1525_s6, 4  ;;  %s1141_s2 = int_to_ptr.vmem [resolvable:$true] %s1140_s2 }
 0x3d9   :  { %v779_v8 = vpack.c.bf16 %v744_v3, %v744_v3  ;;  %v1256_v2 = vmul.f32 -1.442695, %v874_v7 }
 0x3db   :  { %1487 = vpow2.f32 %v1256_v2  ;;  %781 = vrot.lane.b32.xlu1 %v779_v8, %s1524_s20 }
 0x3dc   :  { %1124 = vmatpush.bf16.msra.mxu0 %v1391_v1 }
 0x3e0   :  { %v876_v15 = vpop.f32.mrf.mxu1  ;;  %1125 = vmatpush.bf16.msra.mxu0 %v1390_v61 }
 0x3e1   :  { %v1488_v6 = vpop.eup %1487  ;;  %v1257_v16 = vmul.f32 -1.442695, %v876_v15 }
 0x3e2   :  { %v885_v19 = vadd.f32 1.0, %v1488_v6 }
 0x3e3   :  { %1489 = vpow2.f32 %v1257_v16 }
 0x3e4   :  { %1491 = vrcp.f32 %v885_v19  ;;  %v898_v27 = vand.u32 2147483648, %v885_v19  ;;  %vm892_vm12 = vweird.f32 %v885_v19  ;;  %v896_v28 = vand.u32 2147483647, %v885_v19  ;;  %1126 = vmatpush.bf16.msra.mxu0 %v1389_v0 }
 0x3e6   :  { %v899_v33 = vor.u32 1.1754944e-38, %v898_v27  ;;  %vm897_vm15 = vcmp.eq.f32.partialorder %v896_v28, 8.507059e+37 }
 0x3e8   :  { %1127 = vmatpush.bf16.msra.mxu0 %v1388_v4 }
 0x3e9   :  { %v1490_v20 = vpop.eup %1489 }
 0x3ea   :  { %v1492_v21 = vpop.eup %1491  ;;  %v886_v22 = vadd.f32 1.0, %v1490_v20 }
 0x3eb   :  { %v888_v23 = vmul.f32 %v1492_v21, %v885_v19  ;;  %vm893_vm11 = vweird.f32 %v1492_v21 }
 0x3ec   :  { %1493 = vrcp.f32 %v886_v22  ;;  %vm894_vm13 = vmor %vm892_vm12, %vm893_vm11  ;;  %v913_v34 = vand.u32 2147483648, %v886_v22  ;;  %v911_v36 = vand.u32 2147483647, %v886_v22  ;;  %vm907_vm2 = vweird.f32 %v886_v22 }
 0x3ed   :  { %v889_v9 = vsub.f32 1.0, %v888_v23 }
 0x3ee   :  { %v914_v39 = vor.u32 1.1754944e-38, %v913_v34  ;;  %vm912_vm4 = vcmp.eq.f32.partialorder %v911_v36, 8.507059e+37 }
 0x3ef   :  { %v890_v10 = vmul.f32 %v1492_v21, %v889_v9 }
 0x3f1   :  { %v891_v25 = vadd.f32 %v1492_v21, %v890_v10 }
 0x3f2   :  { %v1494_v26 = vpop.eup %1493 }
 0x3f3   :  { %v903_v29 = vmul.f32 %v1494_v26, %v886_v22  ;;  %v895_v31 = vsel %vm894_vm13, %v1492_v21, %v891_v25  ;;  %vm908_vm1 = vweird.f32 %v1494_v26 }
 0x3f4   :  { %v900_v37 = vsel %vm897_vm15, %v899_v33, %v895_v31  ;;  %vm909_vm3 = vmor %vm907_vm2, %vm908_vm1 }
 0x3f5   :  { %v904_v32 = vsub.f32 1.0, %v903_v29  ;;  %v917_v40 = vmul.f32 %v900_v37, %v874_v7 }
 0x3f6   :  { %v467_v13 = vpop.permute.xlu2 %466 }
 0x3f7   :  { %v905_v35 = vmul.f32 %v1494_v26, %v904_v32  ;;  %470 = vst.msk [vmem:[#allocation3] sm:$0xf] %vm469_vm14, %v467_v13  ;;  %v919_v45 = vmul.f32 %v917_v40, %v844_v30 }
 0x3f9   :  { %v906_v38 = vadd.f32 %v1494_v26, %v905_v35 }
 0x3fb   :  { %v910_v41 = vsel %vm909_vm3, %v1494_v26, %v906_v38 }
 0x3fc   :  { %v915_v42 = vsel %vm912_vm4, %v914_v39, %v910_v41 }
 0x3fd   :  { %v918_v43 = vmul.f32 %v915_v42, %v876_v15 }
 0x3ff   :  { %v920_v17 = vmul.f32 %v918_v43, %v846_v44 }
 0x401   :  { %v921_v46 = vpack.c.bf16 %v920_v17, %v919_v45 }
 0x403   :  { %994 = vmatmul.bf16.vlgmr.msra.gmra.mxu2 %v921_v46 }
 0x40c   :  { %v756_v53 = vpop.permute.xlu2 %755 }
 0x415   :  { %v750_v52 = vpop.permute.xlu1 %749 }
 0x416   :  { %752 = vst.msk [vmem:[#allocation3 + $0x8] sm:$0xf] %vm469_vm14, %v750_v52 }
 0x417   :  { %758 = vst.msk [vmem:[#allocation3 + $0x8] sm:$0xf] %vm476_vm5, %v756_v53 }
 0x41f   :  { %v490_v56 = vpop.permute.xlu2 %489  ;;  %v474_v57 = vpop.permute.xlu0 %473 }
 0x420   :  { %492 = vst.msk [vmem:[#allocation3 + $0x4] sm:$0xf] %vm469_vm14, %v490_v56 }
 0x421   :  { %477 = vst.msk [vmem:[#allocation3] sm:$0xf] %vm476_vm5, %v474_v57 }
 0x427   :  { %v481_v60 = vpop.permute.xlu0 %480 }
 0x428   :  { %484 = vst.msk [vmem:[#allocation3] sm:$0xf] %vm483_vm6, %v481_v60 }
 0x42c   :  { %v762_v63 = vpop.permute.xlu1 %761 }
 0x42d   :  { %764 = vst.msk [vmem:[#allocation3 + $0x8] sm:$0xf] %vm483_vm6, %v762_v63  ;;  %v776_v8 = vpop.permute.xlu2 %775 }
 0x42f   :  { %v1292_v5 = vld [vmem:[#allocation3] sm:$0xf] }
 0x434   :  { %v1379_v3 = vld [vmem:[#allocation3 + $0x4] sm:$0xf0] }
 0x435   :  { %v1293_v62 = vor.u32 %v1379_v3, %v1292_v5 }
 0x437   :  { %1114 = vmatmul.bf16.vlgmr.msra.gmra.mxu3 %v1293_v62 }
 0x43d   :  { %v770_v7 = vpop.permute.xlu0 %769 }
 0x43e   :  { %772 = vst.msk [vmem:[#allocation3 + $0xc] sm:$0xf] %vm469_vm14, %v770_v7 }
 0x43f   :  { %778 = vst.msk [vmem:[#allocation3 + $0xc] sm:$0xf] %vm476_vm5, %v776_v8  ;;  %v496_v2 = vpop.permute.xlu1 %495 }
 0x440   :  { %498 = vst.msk [vmem:[#allocation3 + $0x4] sm:$0xf] %vm476_vm5, %v496_v2 }
 0x447   :  { %v502_v11 = vpop.permute.xlu0 %501 }
 0x448   :  { %504 = vst.msk [vmem:[#allocation3 + $0x4] sm:$0xf] %vm483_vm6, %v502_v11 }
 0x44d   :  { %v782_v12 = vpop.permute.xlu1 %781 }
 0x44e   :  { %784 = vst.msk [vmem:[#allocation3 + $0xc] sm:$0xf] %vm483_vm6, %v782_v12 }
 0x44f   :  { %v1378_v15 = vld [vmem:[#allocation3 + $0x4] sm:$0xf] }
 0x455   :  { %v1294_v6 = vld [vmem:[#allocation3 + $0x8] sm:$0xf0] }
 0x456   :  { %v1297_v16 = vor.u32 %v1378_v15, %v1294_v6 }
 0x458   :  { %1128 = vmatmul.bf16.vlgmr.msra.gmra.mxu0 %v1297_v16 }
 0x486   :  { %v995_v20 = vpop.f32.mrf.mxu2 }
 0x48e   :  { %v997_v9 = vpop.f32.mrf.mxu2 }
 0x4ba   :  { %v1115_v19 = vpop.f32.mrf.mxu3 }
 0x4bb   :  { %v1116_v21 = vadd.f32 %v1115_v19, %v995_v20 }
 0x4c2   :  { %v1117_v24 = vpop.f32.mrf.mxu3 }
 0x4c3   :  { %v1118_v10 = vadd.f32 %v1117_v24, %v997_v9 }
 0x4d5   :  { %v1129_v22 = vpop.f32.mrf.mxu0 }
 0x4d6   :  { %v1130_v23 = vadd.f32 %v1129_v22, %v1116_v21 }
 0x4d8   :  { %1134 = vst.msk [vmem:[#allocation4] sm:$0xff] %vm41_vm0, %v1130_v23 }
 0x4dd   :  { %v1131_v25 = vpop.f32.mrf.mxu0 }
 0x4de   :  { %v1132_v26 = vadd.f32 %v1131_v25, %v1118_v10 }
 0x4e0   :  { %1135 = vst.msk [vmem:[#allocation4 + $0x8] sm:$0xff] %vm41_vm0, %v1132_v26 }
 0x4e1   :  { %1148 = dma.vmem_to_hbm [thread:$0]  %s1141_s2, 256, %s1143_s22, [#allocation5], %s1526_s23, %s1526_s23, %s1527_s24  }
 0x4e2   :  { %1519 = dma.done.wait [#allocation5], 256  }
 0x4e3   :  { %1520 = vsyncadd [#allocation5], 4294967040 }
 0x4e4   :  { %1153 = vsyncpa [#allocation5], 1 }

</bundles_post_ra>
